<compile_context>
chip_gen: v6e
topology: v6e:2x2x1
jax: 0.10.0
libtpu: 0.0.40
codegen_flags: <defaults>
</compile_context>

<pallas_src>
import functools

import jax
import jax.numpy as jnp
from jax.experimental import pallas as pl
from jax.experimental.pallas import tpu as pltpu

_VMEM_LIMIT = 32 * 1024 * 1024   # safe on v5e/v6e/v7x; usage here is a few hundred KiB


# ----------------------------------------------------------------------------
# Fused Pallas kernel (per column tile of points, head-major orientation)
# ----------------------------------------------------------------------------

def _fused_pointnet_kernel(x_ref, w1_ref, b1_ref, wh_ref, bh_ref, out_ref):
    """x: (fin_pad, tile) f32 -> out: (n_heads_pad, tile) f32.

    Layer 1 (both nets side by side, f32, tiny K):   (2H, fin) @ (fin, tile)
    Fused heads (block-diagonal, bf16, K=2H=256):    (16, 2H) @ (2H, tile)
    Head activations (tanh/sigmoid) are applied in the wrapper on sliced columns.
    """
    h = jnp.dot(w1_ref[...], x_ref[...],
                preferred_element_type=jnp.float32) + b1_ref[...]
    h = jnp.maximum(h, 0.0)
    out_ref[...] = (
        jnp.dot(wh_ref[...], h.astype(jnp.bfloat16),
                preferred_element_type=jnp.float32) + bh_ref[...])


def _fused_heads_call(pc_t, w1t, b1t, wht, bht, row_tile):
    """Stream (fin_pad, N) transposed points; weights resident in VMEM."""
    fin_pad, n = pc_t.shape
    two_h = w1t.shape[0]
    n_heads_pad = wht.shape[0]
    return pl.pallas_call(
        _fused_pointnet_kernel,
        out_shape=jax.ShapeDtypeStruct((n_heads_pad, n), jnp.float32),
        grid=(pl.cdiv(n, row_tile),),
        in_specs=[
            pl.BlockSpec((fin_pad, row_tile), lambda i: (0, i)),      # streamed points
            pl.BlockSpec((two_h, fin_pad), lambda i: (0, 0)),         # resident W1^T (f32)
            pl.BlockSpec((two_h, 1), lambda i: (0, 0)),               # resident b1
            pl.BlockSpec((n_heads_pad, two_h), lambda i: (0, 0)),     # resident Wh^T (bf16)
            pl.BlockSpec((n_heads_pad, 1), lambda i: (0, 0)),         # resident bh
        ],
        out_specs=pl.BlockSpec((n_heads_pad, row_tile), lambda i: (0, i)),
        compiler_params=pltpu.CompilerParams(
            dimension_semantics=("parallel",),
            vmem_limit_bytes=_VMEM_LIMIT),
    )(pc_t, w1t, b1t, wht, bht)


# ----------------------------------------------------------------------------
# One-time parameter fusion (zero-map layer-1 columns, block-diagonal heads,
# pre-transpose, pre-cast) -- done once, not per forward call.
# ----------------------------------------------------------------------------

def fuse_params(uresnet_params, cluster_params, num_input_cols, input_features):
    w1u, b1u, wseg, bseg, wgh, bgh = uresnet_params
    cw1, cb1, wemb, bemb, wseed, bseed, wmar, bmar = cluster_params

    fin = num_input_cols
    f = input_features
    hu, hc = w1u.shape[1], cw1.shape[1]
    cluster_in = cw1.shape[0]
    nc, e = wseg.shape[1], wemb.shape[1]

    fin_pad = ((fin + 7) // 8) * 8

    # Layer 1: map each net's input columns onto the full point-cloud columns.
    # UResNet reads the last F columns (features); ClusterCNN reads the first
    # cluster_in columns (batch, x, y, z, feat_0).
    w1u_full = jnp.zeros((fin_pad, hu), jnp.float32).at[fin - f:fin, :].set(w1u)
    w1c_full = jnp.zeros((fin_pad, hc), jnp.float32).at[:cluster_in, :].set(cw1)
    w1 = jnp.concatenate([w1u_full, w1c_full], axis=1)       # (fin_pad, hu+hc)
    b1 = jnp.concatenate([b1u, cb1], axis=1)                  # (1, hu+hc)

    # Heads: block-diagonal over [uresnet hidden | cluster hidden].
    # Row layout: [seg (nc) | ghost (2) | emb (e) | seed (1) | margins (1) | pad]
    heads_u = jnp.concatenate([wseg, wgh], axis=1)             # (hu, nc+2)
    heads_c = jnp.concatenate([wemb, wseed, wmar], axis=1)     # (hc, e+2)
    n_heads = (nc + 2) + (e + 2)
    n_heads_pad = max(8, ((n_heads + 7) // 8) * 8)
    wh = jnp.zeros((hu + hc, n_heads_pad), jnp.float32)
    wh = wh.at[:hu, :nc + 2].set(heads_u)
    wh = wh.at[hu:, nc + 2:n_heads].set(heads_c)
    bh = jnp.zeros((1, n_heads_pad), jnp.float32)
    bh = bh.at[:, :nc + 2].set(jnp.concatenate([bseg, bgh], axis=1))
    bh = bh.at[:, nc + 2:n_heads].set(jnp.concatenate([bemb, bseed, bmar], axis=1))

    # Pre-transpose for the head-major (rows=heads/hidden, lanes=points) kernel.
    return (w1.T,                          # (2H, fin_pad)   f32 (layer-1 stays f32)
            b1.T,                          # (2H, 1)         f32
            wh.T.astype(jnp.bfloat16),     # (n_heads_pad, 2H) bf16
            bh.T)                          # (n_heads_pad, 1) f32


# ----------------------------------------------------------------------------
# Parameter init (deterministic, in-script)
# ----------------------------------------------------------------------------

def _init_linear(key, fan_in, fan_out):
    kw, kb = jax.random.split(key)
    scale = 1.0 / jnp.sqrt(jnp.float32(fan_in))
    w = jax.random.uniform(kw, (fan_in, fan_out), jnp.float32, -scale, scale)
    b = jax.random.uniform(kb, (1, fan_out), jnp.float32, -scale, scale)
    return w, b


def init_params(key, input_features, hidden, num_classes, cluster_in, embed_dim):
    keys = jax.random.split(key, 7)
    # UResNet stand-in
    w1, b1 = _init_linear(keys[0], input_features, hidden)
    wseg, bseg = _init_linear(keys[1], hidden, num_classes)
    wgh, bgh = _init_linear(keys[2], hidden, 2)
    uresnet_params = (w1, b1, wseg, bseg, wgh, bgh)
    # ClusterCNN stand-in
    cw1, cb1 = _init_linear(keys[3], cluster_in, hidden)
    wemb, bemb = _init_linear(keys[4], hidden, embed_dim)
    wseed, bseed = _init_linear(keys[5], hidden, 1)
    wmar, bmar = _init_linear(keys[6], hidden, 1)
    cluster_params = (cw1, cb1, wemb, bemb, wseed, bseed, wmar, bmar)
    return uresnet_params, cluster_params


# ----------------------------------------------------------------------------
# GhostSpatialEmbeddings.forward
# ----------------------------------------------------------------------------

def _pick_row_tile(n, requested):
    # Keep >= 2 grid steps when enough points exist so the "parallel" row axis
    # can span both v7x TensorCores; round to the 128-lane granule.
    half = (((n + 1) // 2) + 127) // 128 * 128
    return max(128, min(requested, half))


@functools.partial(jax.jit, static_argnames=("input_features", "num_classes",
                                             "embed_dim", "row_tile"))
def _fixed_shape_forward(point_cloud, fused_params, input_features,
                         num_classes, embed_dim, row_tile):
    """All static-shape compute (one fused pallas_call) under one jit."""
    n, fin = point_cloud.shape
    w1t, b1t, wht, bht = fused_params
    fin_pad = w1t.shape[1]
    tile = _pick_row_tile(n, row_tile)

    # One small transpose pass so points are the lane axis everywhere in-kernel
    # (output writeback -- the dominant HBM traffic -- becomes lane-dense).
    pc_t = point_cloud.T                                     # (fin, N)
    if fin_pad != fin:
        pc_t = jnp.pad(pc_t, ((0, fin_pad - fin), (0, 0)))   # zero rows, zero weights

    heads = _fused_heads_call(pc_t, w1t, b1t, wht, bht, tile)   # (16, N) f32

    nc, e = num_classes, embed_dim
    seg = heads[:nc, :].T                                    # (N, nc)
    ghost = heads[nc:nc + 2, :].T                            # (N, 2)
    emb = jnp.tanh(heads[nc + 2:nc + 2 + e, :]).T            # (N, e)
    seed = jax.nn.sigmoid(heads[nc + 2 + e:nc + 3 + e, :]).T  # (N, 1)
    mar = heads[nc + 3 + e:nc + 4 + e, :].T                  # (N, 1)

    mask = jnp.argmax(ghost, axis=1) == 0
    if input_features > 1:
        cluster_pc = point_cloud[:, :fin - (input_features - 1)]
    else:
        cluster_pc = point_cloud
    return seg, ghost, mask, cluster_pc, emb, seed, mar


def ghost_spatial_embeddings_forward(inputs, fused_params, input_features,
                                     num_classes, embed_dim, row_tile=1024):
    point_cloud = inputs[0]                      # (N, 4 + input_features)
    seg, ghost, mask, cluster_pc, emb, seed, mar = _fixed_shape_forward(
        point_cloud, fused_params, input_features, num_classes, embed_dim,
        row_tile)

    # Dynamic-shape boolean compaction happens once, eagerly, AFTER all kernel
    # work (exact semantics of the PyTorch forward's ghost masking + column drop).
    new_point_cloud = cluster_pc[mask]
    result = {
        'segmentation': [seg],
        'ghost': [ghost],
        'embeddings': [emb[mask]],
        'seediness': [seed[mask]],
        'margins': [mar[mask]],
    }
    return result, new_point_cloud


# ----------------------------------------------------------------------------
# Demo
# ----------------------------------------------------------------------------

if __name__ == "__main__":
    key = jax.random.PRNGKey(0)
    k_pc, k_batch, k_params = jax.random.split(key, 3)

    N = 2048                # points (2-step row grid at tile=1024 -> both v7x TCs busy)
    input_features = 2      # exercises the column-drop branch
    hidden = 128            # per network; fused hidden = 256 (full MXU K on v6e/v7x)
    num_classes = 5
    embed_dim = 3

    # point cloud: [batch_id, x, y, z, feat_0, feat_1]
    batch_col = jax.random.randint(k_batch, (N, 1), 0, 2).astype(jnp.float32)
    coords = jax.random.uniform(k_pc, (N, 3), jnp.float32, 0.0, 16.0)
    feats = jax.random.normal(jax.random.fold_in(k_pc, 1), (N, input_features),
                              jnp.float32)
    point_cloud = jnp.concatenate([batch_col, coords, feats], axis=1)

    fin = point_cloud.shape[1]
    cluster_in = fin - (input_features - 1)      # cols after feature drop
    uresnet_params, cluster_params = init_params(
        k_params, input_features, hidden, num_classes, cluster_in, embed_dim)
    fused_params = fuse_params(uresnet_params, cluster_params, fin,
                               input_features)   # fused/cast/transposed ONCE

    result, new_pc = ghost_spatial_embeddings_forward(
        (point_cloud,), fused_params, input_features, num_classes, embed_dim)

    for k, v in result.items():
        jax.block_until_ready(v[0])
    jax.block_until_ready(new_pc)

    assert result['segmentation'][0].shape == (N, num_classes)
    assert result['ghost'][0].shape == (N, 2)
    m = new_pc.shape[0]
    assert new_pc.shape[1] == cluster_in
    assert result['embeddings'][0].shape == (m, embed_dim)
    assert result['seediness'][0].shape == (m, 1)
    assert result['margins'][0].shape == (m, 1)

    print("KERNEL_OK")
</pallas_src>

<mosaic_0001>
module attributes {stable_mosaic.version = 11 : i64} {
  func.func @_fused_pointnet_kernel(%arg0: i32, %arg1: memref<8x1024xf32, #tpu.memory_space<vmem>>, %arg2: memref<256x8xf32, #tpu.memory_space<vmem>>, %arg3: memref<256x1xf32, #tpu.memory_space<vmem>>, %arg4: memref<16x256xbf16, #tpu.memory_space<vmem>>, %arg5: memref<16x1xf32, #tpu.memory_space<vmem>>, %arg6: memref<16x1024xf32, #tpu.memory_space<vmem>>) attributes {dimension_semantics = [#tpu.dimension_semantics<parallel>], iteration_bounds = array<i64: 2>, scalar_prefetch = 0 : i64, scratch_operands = 0 : i64, tpu.core_type = #tpu.core_type<tc>, window_params = [{transform_indices = @transform_0, window_bounds = array<i64: 8, 1024>}, {pipeline_mode = #tpu.pipeline_mode<synchronous>, transform_indices = @transform_1, window_bounds = array<i64: 256, 8>}, {pipeline_mode = #tpu.pipeline_mode<synchronous>, transform_indices = @transform_2, window_bounds = array<i64: 256, 1>}, {pipeline_mode = #tpu.pipeline_mode<synchronous>, transform_indices = @transform_3, window_bounds = array<i64: 16, 256>}, {pipeline_mode = #tpu.pipeline_mode<synchronous>, transform_indices = @transform_4, window_bounds = array<i64: 16, 1>}, {transform_indices = @transform_5, window_bounds = array<i64: 16, 1024>}]} {
    %c0 = arith.constant 0 : index
    %c0_0 = arith.constant 0 : index
    %0 = vector.load %arg2[%c0, %c0_0] : memref<256x8xf32, #tpu.memory_space<vmem>>, vector<256x8xf32>
    %c0_1 = arith.constant 0 : index
    %c0_2 = arith.constant 0 : index
    %1 = vector.load %arg1[%c0_1, %c0_2] : memref<8x1024xf32, #tpu.memory_space<vmem>>, vector<8x1024xf32>
    %cst = arith.constant dense<0.000000e+00> : vector<256x1024xf32>
    %2 = tpu.matmul %0, %1, %cst {dimension_numbers = #tpu.dot_dimension_numbers<[1], [0], [0], [1], [0, 0, 1, 1], [], []>} : vector<256x8xf32>, vector<8x1024xf32>, vector<256x1024xf32> -> vector<256x1024xf32>
    %c0_3 = arith.constant 0 : index
    %c0_4 = arith.constant 0 : index
    %3 = vector.load %arg3[%c0_3, %c0_4] : memref<256x1xf32, #tpu.memory_space<vmem>>, vector<256x1xf32>
    %4 = vector.broadcast %3 : vector<256x1xf32> to vector<256x1024xf32>
    %5 = arith.addf %2, %4 : vector<256x1024xf32>
    %cst_5 = arith.constant 0.000000e+00 : f32
    %6 = vector.broadcast %cst_5 : f32 to vector<256x1024xf32>
    %7 = arith.maximumf %5, %6 : vector<256x1024xf32>
    %c0_6 = arith.constant 0 : index
    %c0_7 = arith.constant 0 : index
    %8 = vector.load %arg4[%c0_6, %c0_7] : memref<16x256xbf16, #tpu.memory_space<vmem>>, vector<16x256xbf16>
    %9 = arith.truncf %7 : vector<256x1024xf32> to vector<256x1024xbf16>
    %cst_8 = arith.constant dense<0.000000e+00> : vector<16x1024xf32>
    %10 = tpu.matmul %8, %9, %cst_8 {dimension_numbers = #tpu.dot_dimension_numbers<[1], [0], [0], [1], [0, 0, 1, 1], [], []>} : vector<16x256xbf16>, vector<256x1024xbf16>, vector<16x1024xf32> -> vector<16x1024xf32>
    %c0_9 = arith.constant 0 : index
    %c0_10 = arith.constant 0 : index
    %11 = vector.load %arg5[%c0_9, %c0_10] : memref<16x1xf32, #tpu.memory_space<vmem>>, vector<16x1xf32>
    %12 = vector.broadcast %11 : vector<16x1xf32> to vector<16x1024xf32>
    %13 = arith.addf %10, %12 : vector<16x1024xf32>
    %c0_11 = arith.constant 0 : index
    %c0_12 = arith.constant 0 : index
    %14 = vector.load %arg6[%c0_11, %c0_12] : memref<16x1024xf32, #tpu.memory_space<vmem>>, vector<16x1024xf32>
    tpu.vector_store %arg6[%c0_11, %c0_12], %13 {strides = array<i32>} : memref<16x1024xf32, #tpu.memory_space<vmem>>, vector<16x1024xf32>,
    return
  }
  func.func @transform_0(%arg0: i32) -> (i32, i32) {
    %c0_i32 = arith.constant 0 : i32
    %c0_i32_0 = arith.constant 0 : i32
    return %c0_i32, %arg0 : i32, i32
  }
  func.func @transform_1(%arg0: i32) -> (i32, i32) {
    %c0_i32 = arith.constant 0 : i32
    %c0_i32_0 = arith.constant 0 : i32
    %c0_i32_1 = arith.constant 0 : i32
    return %c0_i32, %c0_i32_0 : i32, i32
  }
  func.func @transform_2(%arg0: i32) -> (i32, i32) {
    %c0_i32 = arith.constant 0 : i32
    %c0_i32_0 = arith.constant 0 : i32
    %c0_i32_1 = arith.constant 0 : i32
    return %c0_i32, %c0_i32_0 : i32, i32
  }
  func.func @transform_3(%arg0: i32) -> (i32, i32) {
    %c0_i32 = arith.constant 0 : i32
    %c0_i32_0 = arith.constant 0 : i32
    %c0_i32_1 = arith.constant 0 : i32
    return %c0_i32, %c0_i32_0 : i32, i32
  }
  func.func @transform_4(%arg0: i32) -> (i32, i32) {
    %c0_i32 = arith.constant 0 : i32
    %c0_i32_0 = arith.constant 0 : i32
    %c0_i32_1 = arith.constant 0 : i32
    return %c0_i32, %c0_i32_0 : i32, i32
  }
  func.func @transform_5(%arg0: i32) -> (i32, i32) {
    %c0_i32 = arith.constant 0 : i32
    %c0_i32_0 = arith.constant 0 : i32
    return %c0_i32, %arg0 : i32, i32
  }
}

</mosaic_0001>

<bundles_post_ra>
// kernel: _fixed_shape_forward.1
= control target key start
LH: loop header
LB: loop body
LE: loop exit
PB: predicated region body
PF: predicated region fallthrough
CT: control target
= control target key end

     0   :  { %s2513_s18 = smov 0   ;;  %s2515_s19 = smov 0   ;;  %s4238_s0 = inlined_call_operand.vmem [shape: f32[8,2048], index: 0, kind: input, shape index: {}]   ;;  %s4239_s1 = inlined_call_operand.vmem [shape: f32[256,8], index: 1, kind: input, shape index: {}]   ;;  %s4240_s2 = inlined_call_operand.vmem [shape: f32[256,1], index: 2, kind: input, shape index: {}]   ;;  %s4241_s3 = inlined_call_operand.vmem [shape: bf16[16,256], index: 3, kind: input, shape index: {}]   ;;  %s4242_s4 = inlined_call_operand.vmem [shape: f32[16,1], index: 4, kind: input, shape index: {}]   ;;  %s4243_s5 = inlined_call_operand.vmem [shape: f32[16,2048], index: 5, kind: output, shape index: {}]  }
   0x1   :  { %s2517_s20 = smov 0  }
   0x2 LB: > { %s2526_s21 = sadd.s32 4294967295, %s2479_s20   ;;  %s2528_s22 = sadd.s32 1, %s2479_s20   ;;  %s2479_s20 = sphi %s2517_s20, %s4558_s20   ;;  %s2475_s19 = sphi %s2515_s19, %s4557_s19   ;;  %s2471_s18 = sphi %s2513_s18, %s4556_s18  }
   0x3   : > { %s129_s23 = ssub.s32 %s2479_s20, %s2528_s22  ;;  %s132_s24 = sadd.s32 1, %s2475_s19 }
   0x4   : > { %p130_p0 = scmp.eq.s32.totalorder %s129_s23, 0  ;;  %p142_p1 = scmp.ne.s32.totalorder %s2475_s19, %s2471_s18 }
   0x5   : > { %p143_p2 = scmp.eq.s32.totalorder %s2526_s21, 1  ;;  %p2286_p3 = scmp.ge.s32.totalorder %s2479_s20, 1 }
   0x6   : > { %s2536_s25 = scalar_select %p130_p0, %s2475_s19, %s132_s24  }
   0x7   : > { %p2538_p4 = por %p143_p2, %p142_p1  ;;  %p188_p5 = scmp.lt.s32.totalorder %s2479_s20, 3 }
   0x9   : > { %p189_p6 = pnand %p2286_p3, %p188_p5 }
   0xb   : > { %192 = sbr.rel (%p189_p6) target bundleno = 720 (0x2d0), region = 40 }
  0x10   : > { %s2288_s27 = sshll.u32 %s2526_s21, 3  ;;  %v4258_v0 = vmov 0.0   ;;  %v2482_v1 = vmov 0   ;;  %v276_v2 = vld [vmem:[%s4240_s2 + $0x70] sm:$0xff]  ;;  %v274_v3 = vld [vmem:[%s4240_s2 + $0x60] sm:$0xff]  ;;  %vm454_vm0 = vcmask 64512  }
  0x11   : > { %p216_p7 = scmp.lt.s32.totalorder %s2288_s27, 15  ;;  %615 = vmatprep.mubr.f32.mxu0 %v4258_v0  ;;  %872 = vmatprep.mubr.f32.mxu1 %v4258_v0  ;;  %v2557_v4 = vld [vmem:[%s4239_s1] sm:$0xff]  ;;  %v2566_v13 = vld [vmem:[%s4239_s1 + $0x8] sm:$0xff]  ;;  %v277_v14 = vld [vmem:[%s4240_s2 + $0x78] sm:$0xff] }
  0x12   : > { %2452 = vset.pattern.permute.xlu0 %v2482_v1  ;;  %2453 = vset.pattern.permute.xlu1 %v2482_v1  ;;  %v275_v15 = vld [vmem:[%s4240_s2 + $0x68] sm:$0xff]  ;;  %v2585_v16 = vld [vmem:[%s4239_s1 + $0x10] sm:$0xff]  ;;  %v273_v18 = vld [vmem:[%s4240_s2 + $0x58] sm:$0xff] }
  0x13   : > { %s4560_s27 = smov (!%p216_p7, %s2288_s27), 15  ;;  %366 = vperm.xlu0 %2452, %v276_v2   ;;  %356 = vperm.xlu1 %2453, %v274_v3   ;;  %v272_v17 = vld [vmem:[%s4240_s2 + $0x50] sm:$0xff]  ;;  %v2602_v19 = vld [vmem:[%s4239_s1 + $0x18] sm:$0xff]  ;;  %v270_v20 = vld [vmem:[%s4240_s2 + $0x40] sm:$0xff] }
  0x14   : > { %s2289_s7 = sshll.u32 %s4560_s27, 3  ;;  %v271_v21 = vld [vmem:[%s4240_s2 + $0x48] sm:$0xff]  ;;  %v2619_v22 = vld [vmem:[%s4239_s1 + $0x20] sm:$0xff]  ;;  %v268_v23 = vld [vmem:[%s4240_s2 + $0x30] sm:$0xff] }
  0x15   : > { %s219_s10 = scalar_lea.vmem %s4238_s0, %s2289_s7  ;;  %v269_v24 = vld [vmem:[%s4240_s2 + $0x38] sm:$0xff]  ;;  %v2636_v25 = vld [vmem:[%s4239_s1 + $0x28] sm:$0xff]  ;;  %v266_v26 = vld [vmem:[%s4240_s2 + $0x20] sm:$0xff] }
  0x16   : > { %v255_v5 = vld [vmem:[%s219_s10 + $0x8] sm:$0xff]  ;;  %v257_v6 = vld [vmem:[%s219_s10 + $0x18] sm:$0xff]  ;;  %v254_v7 = vld [vmem:[%s219_s10] sm:$0xff] }
  0x17   : > { %581 = vmatprep.subr.mxu0 %v255_v5  ;;  %838 = vmatprep.subr.mxu1 %v257_v6  ;;  %v256_v8 = vld [vmem:[%s219_s10 + $0x10] sm:$0xff]  ;;  %v259_v9 = vld [vmem:[%s219_s10 + $0x28] sm:$0xff]  ;;  %v261_v10 = vld [vmem:[%s219_s10 + $0x38] sm:$0xff] }
  0x18   : > { %582 = vmatpush1.msra.mxu0 %v254_v7  ;;  %839 = vmatpush1.msra.mxu1 %v256_v8  ;;  %v258_v11 = vld [vmem:[%s219_s10 + $0x20] sm:$0xff]  ;;  %v260_v12 = vld [vmem:[%s219_s10 + $0x30] sm:$0xff]  ;;  %v267_v27 = vld [vmem:[%s4240_s2 + $0x28] sm:$0xff]  ;;  %s212_s10 = sand.u32 1, %s2471_s18   ;;  %s2425_s18 = sshll.u32 (%p2538_p4), %s2526_s21, 6 }
  0x19   : > { %2290 = vmatmul.mubr.msk.f32.vlgmr.msra.gmra.mxu0 %vm454_vm0, %v2557_v4  ;;  %2322 = vmatmul.mubr.msk.f32.vlgmr.msra.gmra.mxu1 %vm454_vm0, %v2557_v4  ;;  %v2653_v28 = vld [vmem:[%s4239_s1 + $0x30] sm:$0xff]  ;;  %v265_v30 = vld [vmem:[%s4240_s2 + $0x18] sm:$0xff]  ;;  %v262_v32 = vld [vmem:[%s4240_s2] sm:$0xff]  ;;  %s2287_s11 = sshll.u32 %s212_s10, 7  ;;  %s2184_s15 = scalar_lea.vmem (%p2538_p4), %s4243_s5, %s2425_s18 }
  0x1a   : > { %1095 = vmatprep.subr.mxu0 %v259_v9  ;;  %1352 = vmatprep.subr.mxu1 %v261_v10  ;;  %v264_v29 = vld [vmem:[%s4240_s2 + $0x10] sm:$0xff]  ;;  %v2670_v31 = vld [vmem:[%s4239_s1 + $0x38] sm:$0xff]  ;;  %v263_v33 = vld [vmem:[%s4240_s2 + $0x8] sm:$0xff]  ;;  %s4188_s12 = scalar_lea.vmem [#allocation2], %s2287_s11 }
  0x1b   : > { %1096 = vmatpush1.msra.mxu0 %v258_v11  ;;  %1353 = vmatpush1.msra.mxu1 %v260_v12  ;;  %v2687_v34 = vld [vmem:[%s4239_s1 + $0x40] sm:$0xff]  ;;  %v292_v35 = vld [vmem:[%s4240_s2 + $0xf0] sm:$0xff]  ;;  %v293_v36 = vld [vmem:[%s4240_s2 + $0xf8] sm:$0xff] }
  0x1c   : > { %621 = vmatprep.mubr.f32.mxu0 %v4258_v0  ;;  %878 = vmatprep.mubr.f32.mxu1 %v4258_v0  ;;  %v2704_v37 = vld [vmem:[%s4239_s1 + $0x48] sm:$0xff]  ;;  %v290_v38 = vld [vmem:[%s4240_s2 + $0xe0] sm:$0xff]  ;;  %v2721_v40 = vld [vmem:[%s4239_s1 + $0x50] sm:$0xff] }
  0x1d   : > { %2291 = vmatmul.mubr.msk.f32.gmra.mxu0 %vm454_vm0, %v2566_v13  ;;  %2323 = vmatmul.mubr.msk.f32.gmra.mxu1 %vm454_vm0, %v2566_v13  ;;  %v291_v39 = vld [vmem:[%s4240_s2 + $0xe8] sm:$0xff]  ;;  %v288_v41 = vld [vmem:[%s4240_s2 + $0xd0] sm:$0xff]  ;;  %v289_v42 = vld [vmem:[%s4240_s2 + $0xd8] sm:$0xff] }
  0x1e   : > { %627 = vmatprep.mubr.f32.mxu0 %v4258_v0  ;;  %884 = vmatprep.mubr.f32.mxu1 %v4258_v0  ;;  %v2738_v43 = vld [vmem:[%s4239_s1 + $0x58] sm:$0xff]  ;;  %v286_v44 = vld [vmem:[%s4240_s2 + $0xc0] sm:$0xff]  ;;  %v287_v45 = vld [vmem:[%s4240_s2 + $0xc8] sm:$0xff] }
  0x1f   : > { %371 = vperm.xlu0 %2452, %v277_v14   ;;  %361 = vperm.xlu1 %2453, %v275_v15   ;;  %v2755_v46 = vld [vmem:[%s4239_s1 + $0x60] sm:$0xff]  ;;  %v284_v47 = vld [vmem:[%s4240_s2 + $0xb0] sm:$0xff]  ;;  %v285_v48 = vld [vmem:[%s4240_s2 + $0xb8] sm:$0xff] }
  0x20   : > { %v2772_v49 = vld [vmem:[%s4239_s1 + $0x68] sm:$0xff]  ;;  %v282_v50 = vld [vmem:[%s4240_s2 + $0xa0] sm:$0xff]  ;;  %v2789_v52 = vld [vmem:[%s4239_s1 + $0x70] sm:$0xff] }
  0x21   : > { %2292 = vmatmul.mubr.msk.f32.gmra.mxu0 %vm454_vm0, %v2585_v16  ;;  %2324 = vmatmul.mubr.msk.f32.gmra.mxu1 %vm454_vm0, %v2585_v16  ;;  %v283_v51 = vld [vmem:[%s4240_s2 + $0xa8] sm:$0xff]  ;;  %v280_v53 = vld [vmem:[%s4240_s2 + $0x90] sm:$0xff]  ;;  %v281_v54 = vld [vmem:[%s4240_s2 + $0x98] sm:$0xff] }
  0x22   : > { %633 = vmatprep.mubr.f32.mxu0 %v4258_v0  ;;  %890 = vmatprep.mubr.f32.mxu1 %v4258_v0  ;;  %v2806_v55 = vld [vmem:[%s4239_s1 + $0x78] sm:$0xff]  ;;  %v278_v56 = vld [vmem:[%s4240_s2 + $0x80] sm:$0xff]  ;;  %v279_v57 = vld [vmem:[%s4240_s2 + $0x88] sm:$0xff] }
  0x23   : > { %346 = vperm.xlu0 %2452, %v272_v17   ;;  %351 = vperm.xlu1 %2453, %v273_v18   ;;  %v2823_v58 = vld [vmem:[%s4239_s1 + $0x80] sm:$0xff]  ;;  %v1966_v60 = vld [vmem:[%s4242_s4 + $0x8] sm:$0xff]  ;;  %v2851_v62 = vld [vmem:[%s4239_s1 + $0x90] sm:$0xff] }
  0x24   : > { %v1965_v59 = vld [vmem:[%s4242_s4] sm:$0xff]  ;;  %v2840_v61 = vld [vmem:[%s4239_s1 + $0x88] sm:$0xff]  ;;  %v2862_v63 = vld [vmem:[%s4239_s1 + $0x98] sm:$0xff] }
  0x25   : > { %2293 = vmatmul.mubr.msk.f32.gmra.mxu0 %vm454_vm0, %v2602_v19  ;;  %2325 = vmatmul.mubr.msk.f32.gmra.mxu1 %vm454_vm0, %v2602_v19  ;;  %v2873_v1 = vld [vmem:[%s4239_s1 + $0xa0] sm:$0xff]  ;;  %v2884_v2 = vld [vmem:[%s4239_s1 + $0xa8] sm:$0xff]  ;;  %v2895_v3 = vld [vmem:[%s4239_s1 + $0xb0] sm:$0xff] }
  0x26   : > { %639 = vmatprep.mubr.f32.mxu0 %v4258_v0  ;;  %896 = vmatprep.mubr.f32.mxu1 %v4258_v0  ;;  %v2906_v5 = vld [vmem:[%s4239_s1 + $0xb8] sm:$0xff]  ;;  %v2917_v6 = vld [vmem:[%s4239_s1 + $0xc0] sm:$0xff]  ;;  %v2928_v7 = vld [vmem:[%s4239_s1 + $0xc8] sm:$0xff] }
  0x27   : > { %336 = vperm.xlu0 %2452, %v270_v20   ;;  %341 = vperm.xlu1 %2453, %v271_v21   ;;  %v2939_v8 = vld [vmem:[%s4239_s1 + $0xd0] sm:$0xff]  ;;  %v2950_v9 = vld [vmem:[%s4239_s1 + $0xd8] sm:$0xff]  ;;  %v2961_v10 = vld [vmem:[%s4239_s1 + $0xe0] sm:$0xff] }
  0x28   : > { %v2972_v11 = vld [vmem:[%s4239_s1 + $0xe8] sm:$0xff]  ;;  %v2983_v12 = vld [vmem:[%s4239_s1 + $0xf0] sm:$0xff]  ;;  %v2994_v14 = vld [vmem:[%s4239_s1 + $0xf8] sm:$0xff] }
  0x29   : > { %2294 = vmatmul.mubr.msk.f32.gmra.mxu0 %vm454_vm0, %v2619_v22  ;;  %2326 = vmatmul.mubr.msk.f32.gmra.mxu1 %vm454_vm0, %v2619_v22 }
  0x2a   : > { %645 = vmatprep.mubr.f32.mxu0 %v4258_v0  ;;  %902 = vmatprep.mubr.f32.mxu1 %v4258_v0 }
  0x2b   : > { %326 = vperm.xlu0 %2452, %v268_v23   ;;  %331 = vperm.xlu1 %2453, %v269_v24  }
  0x2d   : > { %2295 = vmatmul.mubr.msk.f32.gmra.mxu0 %vm454_vm0, %v2636_v25  ;;  %2327 = vmatmul.mubr.msk.f32.gmra.mxu1 %vm454_vm0, %v2636_v25 }
  0x2e   : > { %651 = vmatprep.mubr.f32.mxu0 %v4258_v0  ;;  %908 = vmatprep.mubr.f32.mxu1 %v4258_v0 }
  0x2f   : > { %316 = vperm.xlu0 %2452, %v266_v26   ;;  %321 = vperm.xlu1 %2453, %v267_v27  }
  0x31   : > { %2296 = vmatmul.mubr.msk.f32.gmra.mxu0 %vm454_vm0, %v2653_v28  ;;  %2328 = vmatmul.mubr.msk.f32.gmra.mxu1 %vm454_vm0, %v2653_v28 }
  0x32   : > { %657 = vmatprep.mubr.f32.mxu0 %v4258_v0  ;;  %914 = vmatprep.mubr.f32.mxu1 %v4258_v0 }
  0x33   : > { %306 = vperm.xlu0 %2452, %v264_v29   ;;  %311 = vperm.xlu1 %2453, %v265_v30  }
  0x35   : > { %2297 = vmatmul.mubr.msk.f32.gmra.mxu0 %vm454_vm0, %v2670_v31  ;;  %2329 = vmatmul.mubr.msk.f32.gmra.mxu1 %vm454_vm0, %v2670_v31 }
  0x36   : > { %663 = vmatprep.mubr.f32.mxu0 %v4258_v0  ;;  %920 = vmatprep.mubr.f32.mxu1 %v4258_v0 }
  0x37   : > { %296 = vperm.xlu0 %2452, %v262_v32   ;;  %301 = vperm.xlu1 %2453, %v263_v33  }
  0x39   : > { %2298 = vmatmul.mubr.msk.f32.gmra.mxu0 %vm454_vm0, %v2687_v34  ;;  %2330 = vmatmul.mubr.msk.f32.gmra.mxu1 %vm454_vm0, %v2687_v34 }
  0x3a   : > { %669 = vmatprep.mubr.f32.mxu0 %v4258_v0  ;;  %926 = vmatprep.mubr.f32.mxu1 %v4258_v0 }
  0x3b   : > { %446 = vperm.xlu0 %2452, %v292_v35   ;;  %451 = vperm.xlu1 %2453, %v293_v36  }
  0x3d   : > { %2299 = vmatmul.mubr.msk.f32.gmra.mxu0 %vm454_vm0, %v2704_v37  ;;  %2331 = vmatmul.mubr.msk.f32.gmra.mxu1 %vm454_vm0, %v2704_v37 }
  0x3e   : > { %675 = vmatprep.mubr.f32.mxu0 %v4258_v0  ;;  %932 = vmatprep.mubr.f32.mxu1 %v4258_v0 }
  0x3f   : > { %436 = vperm.xlu0 %2452, %v290_v38   ;;  %441 = vperm.xlu1 %2453, %v291_v39  }
  0x41   : > { %2300 = vmatmul.mubr.msk.f32.gmra.mxu0 %vm454_vm0, %v2721_v40  ;;  %2332 = vmatmul.mubr.msk.f32.gmra.mxu1 %vm454_vm0, %v2721_v40 }
  0x42   : > { %681 = vmatprep.mubr.f32.mxu0 %v4258_v0  ;;  %938 = vmatprep.mubr.f32.mxu1 %v4258_v0 }
  0x43   : > { %426 = vperm.xlu0 %2452, %v288_v41   ;;  %431 = vperm.xlu1 %2453, %v289_v42  }
  0x45   : > { %2301 = vmatmul.mubr.msk.f32.gmra.mxu0 %vm454_vm0, %v2738_v43  ;;  %2333 = vmatmul.mubr.msk.f32.gmra.mxu1 %vm454_vm0, %v2738_v43 }
  0x46   : > { %687 = vmatprep.mubr.f32.mxu0 %v4258_v0  ;;  %944 = vmatprep.mubr.f32.mxu1 %v4258_v0 }
  0x47   : > { %416 = vperm.xlu0 %2452, %v286_v44   ;;  %421 = vperm.xlu1 %2453, %v287_v45  }
  0x49   : > { %2302 = vmatmul.mubr.msk.f32.gmra.mxu0 %vm454_vm0, %v2755_v46  ;;  %2334 = vmatmul.mubr.msk.f32.gmra.mxu1 %vm454_vm0, %v2755_v46 }
  0x4a   : > { %693 = vmatprep.mubr.f32.mxu0 %v4258_v0  ;;  %950 = vmatprep.mubr.f32.mxu1 %v4258_v0 }
  0x4b   : > { %406 = vperm.xlu0 %2452, %v284_v47   ;;  %411 = vperm.xlu1 %2453, %v285_v48  }
  0x4d   : > { %2303 = vmatmul.mubr.msk.f32.gmra.mxu0 %vm454_vm0, %v2772_v49  ;;  %2335 = vmatmul.mubr.msk.f32.gmra.mxu1 %vm454_vm0, %v2772_v49 }
  0x4e   : > { %699 = vmatprep.mubr.f32.mxu0 %v4258_v0  ;;  %956 = vmatprep.mubr.f32.mxu1 %v4258_v0 }
  0x4f   : > { %396 = vperm.xlu0 %2452, %v282_v50   ;;  %401 = vperm.xlu1 %2453, %v283_v51  }
  0x51   : > { %2304 = vmatmul.mubr.msk.f32.gmra.mxu0 %vm454_vm0, %v2789_v52  ;;  %2336 = vmatmul.mubr.msk.f32.gmra.mxu1 %vm454_vm0, %v2789_v52 }
  0x52   : > { %705 = vmatprep.mubr.f32.mxu0 %v4258_v0  ;;  %962 = vmatprep.mubr.f32.mxu1 %v4258_v0 }
  0x53   : > { %386 = vperm.xlu0 %2452, %v280_v53   ;;  %391 = vperm.xlu1 %2453, %v281_v54  }
  0x55   : > { %2305 = vmatmul.mubr.msk.f32.gmra.mxu0 %vm454_vm0, %v2806_v55  ;;  %2337 = vmatmul.mubr.msk.f32.gmra.mxu1 %vm454_vm0, %v2806_v55 }
  0x56   : > { %711 = vmatprep.mubr.f32.mxu0 %v4258_v0  ;;  %968 = vmatprep.mubr.f32.mxu1 %v4258_v0 }
  0x57   : > { %376 = vperm.xlu0 %2452, %v278_v56   ;;  %381 = vperm.xlu1 %2453, %v279_v57  }
  0x59   : > { %2306 = vmatmul.mubr.msk.f32.gmra.mxu0 %vm454_vm0, %v2823_v58  ;;  %2338 = vmatmul.mubr.msk.f32.gmra.mxu1 %vm454_vm0, %v2823_v58 }
  0x5a   : > { %717 = vmatprep.mubr.f32.mxu0 %v4258_v0  ;;  %974 = vmatprep.mubr.f32.mxu1 %v4258_v0 }
  0x5b   : > { %1969 = vperm.xlu0 %2452, %v1965_v59   ;;  %1974 = vperm.xlu1 %2453, %v1966_v60  }
  0x5d   : > { %2307 = vmatmul.mubr.msk.f32.gmra.mxu0 %vm454_vm0, %v2840_v61  ;;  %2339 = vmatmul.mubr.msk.f32.gmra.mxu1 %vm454_vm0, %v2840_v61 }
  0x5e   : > { %723 = vmatprep.mubr.f32.mxu0 %v4258_v0  ;;  %980 = vmatprep.mubr.f32.mxu1 %v4258_v0 }
  0x61   : > { %2308 = vmatmul.mubr.msk.f32.gmra.mxu0 %vm454_vm0, %v2851_v62  ;;  %2340 = vmatmul.mubr.msk.f32.gmra.mxu1 %vm454_vm0, %v2851_v62 }
  0x62   : > { %729 = vmatprep.mubr.f32.mxu0 %v4258_v0  ;;  %986 = vmatprep.mubr.f32.mxu1 %v4258_v0 }
  0x65   : > { %2309 = vmatmul.mubr.msk.f32.gmra.mxu0 %vm454_vm0, %v2862_v63  ;;  %2341 = vmatmul.mubr.msk.f32.gmra.mxu1 %vm454_vm0, %v2862_v63 }
  0x66   : > { %735 = vmatprep.mubr.f32.mxu0 %v4258_v0  ;;  %992 = vmatprep.mubr.f32.mxu1 %v4258_v0 }
  0x69   : > { %2310 = vmatmul.mubr.msk.f32.gmra.mxu0 %vm454_vm0, %v2873_v1  ;;  %2342 = vmatmul.mubr.msk.f32.gmra.mxu1 %vm454_vm0, %v2873_v1 }
  0x6a   : > { %741 = vmatprep.mubr.f32.mxu0 %v4258_v0  ;;  %998 = vmatprep.mubr.f32.mxu1 %v4258_v0 }
  0x6d   : > { %2311 = vmatmul.mubr.msk.f32.gmra.mxu0 %vm454_vm0, %v2884_v2  ;;  %2343 = vmatmul.mubr.msk.f32.gmra.mxu1 %vm454_vm0, %v2884_v2 }
  0x6e   : > { %747 = vmatprep.mubr.f32.mxu0 %v4258_v0  ;;  %1004 = vmatprep.mubr.f32.mxu1 %v4258_v0 }
  0x71   : > { %2312 = vmatmul.mubr.msk.f32.gmra.mxu0 %vm454_vm0, %v2895_v3  ;;  %2344 = vmatmul.mubr.msk.f32.gmra.mxu1 %vm454_vm0, %v2895_v3 }
  0x72   : > { %753 = vmatprep.mubr.f32.mxu0 %v4258_v0  ;;  %1010 = vmatprep.mubr.f32.mxu1 %v4258_v0 }
  0x75   : > { %2313 = vmatmul.mubr.msk.f32.gmra.mxu0 %vm454_vm0, %v2906_v5  ;;  %2345 = vmatmul.mubr.msk.f32.gmra.mxu1 %vm454_vm0, %v2906_v5 }
  0x76   : > { %759 = vmatprep.mubr.f32.mxu0 %v4258_v0  ;;  %1016 = vmatprep.mubr.f32.mxu1 %v4258_v0 }
  0x79   : > { %2314 = vmatmul.mubr.msk.f32.gmra.mxu0 %vm454_vm0, %v2917_v6  ;;  %2346 = vmatmul.mubr.msk.f32.gmra.mxu1 %vm454_vm0, %v2917_v6 }
  0x7a   : > { %765 = vmatprep.mubr.f32.mxu0 %v4258_v0  ;;  %1022 = vmatprep.mubr.f32.mxu1 %v4258_v0 }
  0x7d   : > { %2315 = vmatmul.mubr.msk.f32.gmra.mxu0 %vm454_vm0, %v2928_v7  ;;  %2347 = vmatmul.mubr.msk.f32.gmra.mxu1 %vm454_vm0, %v2928_v7 }
  0x7e   : > { %771 = vmatprep.mubr.f32.mxu0 %v4258_v0  ;;  %1028 = vmatprep.mubr.f32.mxu1 %v4258_v0 }
  0x81   : > { %2316 = vmatmul.mubr.msk.f32.gmra.mxu0 %vm454_vm0, %v2939_v8  ;;  %2348 = vmatmul.mubr.msk.f32.gmra.mxu1 %vm454_vm0, %v2939_v8 }
  0x82   : > { %777 = vmatprep.mubr.f32.mxu0 %v4258_v0  ;;  %1034 = vmatprep.mubr.f32.mxu1 %v4258_v0 }
  0x85   : > { %2317 = vmatmul.mubr.msk.f32.gmra.mxu0 %vm454_vm0, %v2950_v9  ;;  %2349 = vmatmul.mubr.msk.f32.gmra.mxu1 %vm454_vm0, %v2950_v9 }
  0x86   : > { %783 = vmatprep.mubr.f32.mxu0 %v4258_v0  ;;  %1040 = vmatprep.mubr.f32.mxu1 %v4258_v0 }
  0x89   : > { %2318 = vmatmul.mubr.msk.f32.gmra.mxu0 %vm454_vm0, %v2961_v10  ;;  %2350 = vmatmul.mubr.msk.f32.gmra.mxu1 %vm454_vm0, %v2961_v10 }
  0x8a   : > { %789 = vmatprep.mubr.f32.mxu0 %v4258_v0  ;;  %1046 = vmatprep.mubr.f32.mxu1 %v4258_v0 }
  0x8d   : > { %2319 = vmatmul.mubr.msk.f32.gmra.mxu0 %vm454_vm0, %v2972_v11  ;;  %2351 = vmatmul.mubr.msk.f32.gmra.mxu1 %vm454_vm0, %v2972_v11 }
  0x8e   : > { %795 = vmatprep.mubr.f32.mxu0 %v4258_v0  ;;  %1052 = vmatprep.mubr.f32.mxu1 %v4258_v0 }
  0x91   : > { %2320 = vmatmul.mubr.msk.f32.gmra.mxu0 %vm454_vm0, %v2983_v12  ;;  %2352 = vmatmul.mubr.msk.f32.gmra.mxu1 %vm454_vm0, %v2983_v12 }
  0x92   : > { %801 = vmatprep.mubr.f32.mxu0 %v4258_v0  ;;  %1058 = vmatprep.mubr.f32.mxu1 %v4258_v0 }
  0x95   : > { %2321 = vmatmul.mubr.msk.f32.gmra.mxu0 %vm454_vm0, %v2994_v14  ;;  %2353 = vmatmul.mubr.msk.f32.gmra.mxu1 %vm454_vm0, %v2994_v14 }
  0x96   : > { %1129 = vmatprep.mubr.f32.mxu0 %v4258_v0  ;;  %1386 = vmatprep.mubr.f32.mxu1 %v4258_v0 }
  0x99   : > { %2354 = vmatmul.mubr.msk.f32.vlgmr.msra.gmra.mxu0 %vm454_vm0, %v2557_v4  ;;  %2386 = vmatmul.mubr.msk.f32.vlgmr.msra.gmra.mxu1 %vm454_vm0, %v2557_v4  ;;  %v3038_v4 = vpop.permute.xlu0 %366 }
  0x9a   : > { %1135 = vmatprep.mubr.f32.mxu0 %v4258_v0  ;;  %1392 = vmatprep.mubr.f32.mxu1 %v4258_v0  ;;  %4324 = vst [vmem:[#allocation3_spill] sm:$0xff] %v3038_v4 }
  0x9d   : > { %2355 = vmatmul.mubr.msk.f32.gmra.mxu0 %vm454_vm0, %v2566_v13  ;;  %2387 = vmatmul.mubr.msk.f32.gmra.mxu1 %vm454_vm0, %v2566_v13  ;;  %v3040_v13 = vpop.permute.xlu1 %356  ;;  %v3048_v15 = vpop.permute.xlu0 %371 }
  0x9e   : > { %1141 = vmatprep.mubr.f32.mxu0 %v4258_v0  ;;  %1398 = vmatprep.mubr.f32.mxu1 %v4258_v0  ;;  %4325 = vst [vmem:[#allocation4_spill] sm:$0xff] %v3040_v13  ;;  %4326 = vst [vmem:[#allocation5_spill] sm:$0xff] %v3048_v15 }
  0xa1   : > { %2356 = vmatmul.mubr.msk.f32.gmra.mxu0 %vm454_vm0, %v2585_v16  ;;  %2388 = vmatmul.mubr.msk.f32.gmra.mxu1 %vm454_vm0, %v2585_v16  ;;  %v3056_v16 = vpop.permute.xlu1 %361  ;;  %v3064_v17 = vpop.permute.xlu0 %346 }
  0xa2   : > { %1147 = vmatprep.mubr.f32.mxu0 %v4258_v0  ;;  %1404 = vmatprep.mubr.f32.mxu1 %v4258_v0  ;;  %4327 = vst [vmem:[#allocation6_spill] sm:$0xff] %v3056_v16  ;;  %4328 = vst [vmem:[#allocation7_spill] sm:$0xff] %v3064_v17 }
  0xa5   : > { %2357 = vmatmul.mubr.msk.f32.gmra.mxu0 %vm454_vm0, %v2602_v19  ;;  %2389 = vmatmul.mubr.msk.f32.gmra.mxu1 %vm454_vm0, %v2602_v19  ;;  %v3066_v18 = vpop.permute.xlu1 %351  ;;  %v3074_v19 = vpop.permute.xlu0 %336 }
  0xa6   : > { %1153 = vmatprep.mubr.f32.mxu0 %v4258_v0  ;;  %1410 = vmatprep.mubr.f32.mxu1 %v4258_v0  ;;  %4329 = vst [vmem:[#allocation8_spill] sm:$0xff] %v3066_v18  ;;  %4330 = vst [vmem:[#allocation9_spill] sm:$0xff] %v3074_v19 }
  0xa9   : > { %2358 = vmatmul.mubr.msk.f32.gmra.mxu0 %vm454_vm0, %v2619_v22  ;;  %2390 = vmatmul.mubr.msk.f32.gmra.mxu1 %vm454_vm0, %v2619_v22  ;;  %v3082_v20 = vpop.permute.xlu1 %341  ;;  %v3090_v21 = vpop.permute.xlu0 %326 }
  0xaa   : > { %1159 = vmatprep.mubr.f32.mxu0 %v4258_v0  ;;  %1416 = vmatprep.mubr.f32.mxu1 %v4258_v0  ;;  %4331 = vst [vmem:[#allocation10_spill] sm:$0xff] %v3082_v20  ;;  %4332 = vst [vmem:[#allocation11_spill] sm:$0xff] %v3090_v21 }
  0xad   : > { %2359 = vmatmul.mubr.msk.f32.gmra.mxu0 %vm454_vm0, %v2636_v25  ;;  %2391 = vmatmul.mubr.msk.f32.gmra.mxu1 %vm454_vm0, %v2636_v25  ;;  %v3092_v22 = vpop.permute.xlu1 %331  ;;  %v3100_v23 = vpop.permute.xlu0 %316 }
  0xae   : > { %1165 = vmatprep.mubr.f32.mxu0 %v4258_v0  ;;  %1422 = vmatprep.mubr.f32.mxu1 %v4258_v0  ;;  %4333 = vst [vmem:[#allocation12_spill] sm:$0xff] %v3092_v22  ;;  %4334 = vst [vmem:[#allocation13_spill] sm:$0xff] %v3100_v23 }
  0xb1   : > { %2360 = vmatmul.mubr.msk.f32.gmra.mxu0 %vm454_vm0, %v2653_v28  ;;  %2392 = vmatmul.mubr.msk.f32.gmra.mxu1 %vm454_vm0, %v2653_v28  ;;  %v3108_v24 = vpop.permute.xlu1 %321  ;;  %v3116_v25 = vpop.permute.xlu0 %306 }
  0xb2   : > { %1171 = vmatprep.mubr.f32.mxu0 %v4258_v0  ;;  %1428 = vmatprep.mubr.f32.mxu1 %v4258_v0  ;;  %4335 = vst [vmem:[#allocation14_spill] sm:$0xff] %v3108_v24  ;;  %4336 = vst [vmem:[#allocation15_spill] sm:$0xff] %v3116_v25 }
  0xb5   : > { %2361 = vmatmul.mubr.msk.f32.gmra.mxu0 %vm454_vm0, %v2670_v31  ;;  %2393 = vmatmul.mubr.msk.f32.gmra.mxu1 %vm454_vm0, %v2670_v31  ;;  %v3118_v26 = vpop.permute.xlu1 %311  ;;  %v3126_v27 = vpop.permute.xlu0 %296 }
  0xb6   : > { %1177 = vmatprep.mubr.f32.mxu0 %v4258_v0  ;;  %1434 = vmatprep.mubr.f32.mxu1 %v4258_v0  ;;  %4337 = vst [vmem:[#allocation16_spill] sm:$0xff] %v3118_v26  ;;  %4338 = vst [vmem:[#allocation17_spill] sm:$0xff] %v3126_v27 }
  0xb9   : > { %2362 = vmatmul.mubr.msk.f32.gmra.mxu0 %vm454_vm0, %v2687_v34  ;;  %2394 = vmatmul.mubr.msk.f32.gmra.mxu1 %vm454_vm0, %v2687_v34  ;;  %v3134_v30 = vpop.permute.xlu1 %301 }
  0xba   : > { %1183 = vmatprep.mubr.f32.mxu0 %v4258_v0  ;;  %1440 = vmatprep.mubr.f32.mxu1 %v4258_v0  ;;  %4339 = vst [vmem:[#allocation18_spill] sm:$0xff] %v3134_v30 }
  0xbd   : > { %2363 = vmatmul.mubr.msk.f32.gmra.mxu0 %vm454_vm0, %v2704_v37  ;;  %2395 = vmatmul.mubr.msk.f32.gmra.mxu1 %vm454_vm0, %v2704_v37 }
  0xbe   : > { %1189 = vmatprep.mubr.f32.mxu0 %v4258_v0  ;;  %1446 = vmatprep.mubr.f32.mxu1 %v4258_v0 }
  0xc1   : > { %2364 = vmatmul.mubr.msk.f32.gmra.mxu0 %vm454_vm0, %v2721_v40  ;;  %2396 = vmatmul.mubr.msk.f32.gmra.mxu1 %vm454_vm0, %v2721_v40 }
  0xc2   : > { %1195 = vmatprep.mubr.f32.mxu0 %v4258_v0  ;;  %1452 = vmatprep.mubr.f32.mxu1 %v4258_v0 }
  0xc5   : > { %2365 = vmatmul.mubr.msk.f32.gmra.mxu0 %vm454_vm0, %v2738_v43  ;;  %2397 = vmatmul.mubr.msk.f32.gmra.mxu1 %vm454_vm0, %v2738_v43 }
  0xc6   : > { %1201 = vmatprep.mubr.f32.mxu0 %v4258_v0  ;;  %1458 = vmatprep.mubr.f32.mxu1 %v4258_v0 }
  0xc9   : > { %2366 = vmatmul.mubr.msk.f32.gmra.mxu0 %vm454_vm0, %v2755_v46  ;;  %2398 = vmatmul.mubr.msk.f32.gmra.mxu1 %vm454_vm0, %v2755_v46 }
  0xca   : > { %1207 = vmatprep.mubr.f32.mxu0 %v4258_v0  ;;  %1464 = vmatprep.mubr.f32.mxu1 %v4258_v0 }
  0xcd   : > { %2367 = vmatmul.mubr.msk.f32.gmra.mxu0 %vm454_vm0, %v2772_v49  ;;  %2399 = vmatmul.mubr.msk.f32.gmra.mxu1 %vm454_vm0, %v2772_v49 }
  0xce   : > { %1213 = vmatprep.mubr.f32.mxu0 %v4258_v0  ;;  %1470 = vmatprep.mubr.f32.mxu1 %v4258_v0 }
  0xd1   : > { %2368 = vmatmul.mubr.msk.f32.gmra.mxu0 %vm454_vm0, %v2789_v52  ;;  %2400 = vmatmul.mubr.msk.f32.gmra.mxu1 %vm454_vm0, %v2789_v52 }
  0xd2   : > { %1219 = vmatprep.mubr.f32.mxu0 %v4258_v0  ;;  %1476 = vmatprep.mubr.f32.mxu1 %v4258_v0 }
  0xd5   : > { %2369 = vmatmul.mubr.msk.f32.gmra.mxu0 %vm454_vm0, %v2806_v55  ;;  %2401 = vmatmul.mubr.msk.f32.gmra.mxu1 %vm454_vm0, %v2806_v55 }
  0xd6   : > { %1225 = vmatprep.mubr.f32.mxu0 %v4258_v0  ;;  %1482 = vmatprep.mubr.f32.mxu1 %v4258_v0 }
  0xd9   : > { %v617_v28 = vpop.f32.mrf.mxu0  ;;  %v874_v29 = vpop.f32.mrf.mxu1  ;;  %2370 = vmatmul.mubr.msk.f32.gmra.mxu0 %vm454_vm0, %v2823_v58  ;;  %2402 = vmatmul.mubr.msk.f32.gmra.mxu1 %vm454_vm0, %v2823_v58 }
  0xda   : > { %1231 = vmatprep.mubr.f32.mxu0 %v4258_v0  ;;  %1488 = vmatprep.mubr.f32.mxu1 %v4258_v0  ;;  %v618_v33 = vadd.f32 %v617_v28, %v3126_v27  ;;  %v875_v34 = vadd.f32 %v874_v29, %v3126_v27 }
  0xdb   : > { %v619_v31 = vpop.f32.mrf.mxu0  ;;  %v876_v32 = vpop.f32.mrf.mxu1 }
  0xdc   : > { %v620_v35 = vadd.f32 %v619_v31, %v3126_v27  ;;  %v877_v36 = vadd.f32 %v876_v32, %v3126_v27  ;;  %v1579_v41 = vmax.f32 %v618_v33, 0.0  ;;  %v1581_v42 = vmax.f32 %v875_v34, 0.0 }
  0xdd   : > { %v623_v37 = vpop.f32.mrf.mxu0  ;;  %v880_v38 = vpop.f32.mrf.mxu1  ;;  %2371 = vmatmul.mubr.msk.f32.gmra.mxu0 %vm454_vm0, %v2840_v61  ;;  %2403 = vmatmul.mubr.msk.f32.gmra.mxu1 %vm454_vm0, %v2840_v61 }
  0xde   : > { %v624_v39 = vadd.f32 %v623_v37, %v3134_v30  ;;  %v881_v40 = vadd.f32 %v880_v38, %v3134_v30  ;;  %1237 = vmatprep.mubr.f32.mxu0 %v4258_v0  ;;  %1494 = vmatprep.mubr.f32.mxu1 %v4258_v0  ;;  %v1580_v49 = vmax.f32 %v620_v35, 0.0  ;;  %v1582_v50 = vmax.f32 %v877_v36, 0.0 }
  0xdf   : > { %v625_v43 = vpop.f32.mrf.mxu0  ;;  %v882_v44 = vpop.f32.mrf.mxu1 }
  0xe0   : > { %v1587_v45 = vmax.f32 %v624_v39, 0.0  ;;  %v1589_v46 = vmax.f32 %v881_v40, 0.0  ;;  %v626_v47 = vadd.f32 %v625_v43, %v3134_v30  ;;  %v883_v48 = vadd.f32 %v882_v44, %v3134_v30 }
  0xe1   : > { %v629_v51 = vpop.f32.mrf.mxu0  ;;  %v886_v52 = vpop.f32.mrf.mxu1  ;;  %2372 = vmatmul.mubr.msk.f32.gmra.mxu0 %vm454_vm0, %v2851_v62  ;;  %2404 = vmatmul.mubr.msk.f32.gmra.mxu1 %vm454_vm0, %v2851_v62 }
  0xe2   : > { %v3154_v53 = vpack.c.bf16 %v1587_v45, %v1579_v41  ;;  %v3156_v54 = vpack.c.bf16 %v1589_v46, %v1581_v42  ;;  %v1588_v55 = vmax.f32 %v626_v47, 0.0  ;;  %v1590_v56 = vmax.f32 %v883_v48, 0.0  ;;  %1243 = vmatprep.mubr.f32.mxu0 %v4258_v0  ;;  %1500 = vmatprep.mubr.f32.mxu1 %v4258_v0 }
  0xe3   : > { %v630_v57 = vadd.f32 %v629_v51, %v3116_v25  ;;  %v887_v58 = vadd.f32 %v886_v52, %v3116_v25  ;;  %v631_v59 = vpop.f32.mrf.mxu0  ;;  %v888_v60 = vpop.f32.mrf.mxu1 }
  0xe4   : > { %4340 = vst [vmem:[#allocation19_spill] sm:$0xff] %v3154_v53  ;;  %4341 = vst [vmem:[#allocation20_spill] sm:$0xff] %v3156_v54  ;;  %v3162_v61 = vpack.c.bf16 %v1588_v55, %v1580_v49  ;;  %v3164_v28 = vpack.c.bf16 %v1590_v56, %v1582_v50  ;;  %v632_v62 = vadd.f32 %v631_v59, %v3116_v25 }
  0xe5   : > { %v889_v29 = vadd.f32 %v888_v60, %v3116_v25  ;;  %v635_v31 = vpop.f32.mrf.mxu0  ;;  %v892_v32 = vpop.f32.mrf.mxu1  ;;  %2373 = vmatmul.mubr.msk.f32.gmra.mxu0 %vm454_vm0, %v2862_v63  ;;  %2405 = vmatmul.mubr.msk.f32.gmra.mxu1 %vm454_vm0, %v2862_v63  ;;  %v1595_v35 = vmax.f32 %v630_v57, 0.0  ;;  %v1597_v36 = vmax.f32 %v887_v58, 0.0 }
  0xe6   : > { %4342 = vst [vmem:[#allocation21_spill] sm:$0xff] %v3162_v61  ;;  %4343 = vst [vmem:[#allocation22_spill] sm:$0xff] %v3164_v28  ;;  %v636_v33 = vadd.f32 %v635_v31, %v3118_v26  ;;  %v893_v34 = vadd.f32 %v892_v32, %v3118_v26  ;;  %1249 = vmatprep.mubr.f32.mxu0 %v4258_v0  ;;  %1506 = vmatprep.mubr.f32.mxu1 %v4258_v0  ;;  %v1596_v43 = vmax.f32 %v632_v62, 0.0  ;;  %v3210_v57 = vpop.permute.xlu0 %446  ;;  %v3212_v60 = vpop.permute.xlu1 %451 }
  0xe7   : > { %v637_v37 = vpop.f32.mrf.mxu0  ;;  %v894_v38 = vpop.f32.mrf.mxu1  ;;  %v1598_v63 = vmax.f32 %v889_v29, 0.0  ;;  %4348 = vst [vmem:[#allocation27_spill] sm:$0xff] %v3210_v57  ;;  %4349 = vst [vmem:[#allocation28_spill] sm:$0xff] %v3212_v60 }
  0xe8   : > { %v1603_v39 = vmax.f32 %v636_v33, 0.0  ;;  %v1605_v40 = vmax.f32 %v893_v34, 0.0  ;;  %v638_v41 = vadd.f32 %v637_v37, %v3118_v26  ;;  %v895_v42 = vadd.f32 %v894_v38, %v3118_v26 }
  0xe9   : > { %v3178_v44 = vpop.f32.mrf.mxu0  ;;  %v3180_v45 = vpop.f32.mrf.mxu1  ;;  %2374 = vmatmul.mubr.msk.f32.gmra.mxu0 %vm454_vm0, %v2873_v1  ;;  %2406 = vmatmul.mubr.msk.f32.gmra.mxu1 %vm454_vm0, %v2873_v1 }
  0xea   : > { %v3186_v46 = vpack.c.bf16 %v1603_v39, %v1595_v35  ;;  %v3188_v47 = vpack.c.bf16 %v1605_v40, %v1597_v36  ;;  %v1604_v48 = vmax.f32 %v638_v41, 0.0  ;;  %v1606_v49 = vmax.f32 %v895_v42, 0.0  ;;  %1255 = vmatprep.mubr.f32.mxu0 %v4258_v0  ;;  %1512 = vmatprep.mubr.f32.mxu1 %v4258_v0  ;;  %v3224_v32 = vpop.permute.xlu0 %436 }
  0xeb   : > { %v3192_v50 = vpop.f32.mrf.mxu0  ;;  %v3194_v51 = vpop.f32.mrf.mxu1  ;;  %4350 = vst [vmem:[#allocation29_spill] sm:$0xff] %v3224_v32 }
  0xec   : > { %4344 = vst [vmem:[#allocation23_spill] sm:$0xff] %v3186_v46  ;;  %4345 = vst [vmem:[#allocation24_spill] sm:$0xff] %v3188_v47  ;;  %v3196_v52 = vpack.c.bf16 %v1604_v48, %v1596_v43  ;;  %v3198_v55 = vpack.c.bf16 %v1606_v49, %v1598_v63 }
  0xed   : > { %v3200_v56 = vpop.f32.mrf.mxu0  ;;  %v3202_v1 = vpop.f32.mrf.mxu1  ;;  %2375 = vmatmul.mubr.msk.f32.gmra.mxu0 %vm454_vm0, %v2884_v2  ;;  %2407 = vmatmul.mubr.msk.f32.gmra.mxu1 %vm454_vm0, %v2884_v2 }
  0xee   : > { %4346 = vst [vmem:[#allocation25_spill] sm:$0xff] %v3196_v52  ;;  %4347 = vst [vmem:[#allocation26_spill] sm:$0xff] %v3198_v55  ;;  %1261 = vmatprep.mubr.f32.mxu0 %v4258_v0  ;;  %1518 = vmatprep.mubr.f32.mxu1 %v4258_v0 }
  0xef   : > { %v649_v58 = vpop.f32.mrf.mxu0  ;;  %v906_v59 = vpop.f32.mrf.mxu1 }
  0xf1   : > { %v3214_v62 = vpop.f32.mrf.mxu0  ;;  %v3216_v29 = vpop.f32.mrf.mxu1  ;;  %2376 = vmatmul.mubr.msk.f32.gmra.mxu0 %vm454_vm0, %v2895_v3  ;;  %2408 = vmatmul.mubr.msk.f32.gmra.mxu1 %vm454_vm0, %v2895_v3 }
  0xf2   : > { %1267 = vmatprep.mubr.f32.mxu0 %v4258_v0  ;;  %1524 = vmatprep.mubr.f32.mxu1 %v4258_v0  ;;  %v3232_v3 = vpop.permute.xlu1 %441 }
  0xf3   : > { %v655_v2 = vpop.f32.mrf.mxu0  ;;  %v912_v31 = vpop.f32.mrf.mxu1  ;;  %4351 = vst [vmem:[#allocation30_spill] sm:$0xff] %v3232_v3  ;;  %v3286_v3 = vadd.f32 %v906_v59, %v3108_v24 }
  0xf4   : > { %v656_v59 = vadd.f32 %v655_v2, %v3090_v21 }
  0xf5   : > { %v659_v33 = vpop.f32.mrf.mxu0  ;;  %v916_v34 = vpop.f32.mrf.mxu1  ;;  %2377 = vmatmul.mubr.msk.f32.gmra.mxu0 %vm454_vm0, %v2906_v5  ;;  %2409 = vmatmul.mubr.msk.f32.gmra.mxu1 %vm454_vm0, %v2906_v5  ;;  %4358 = vst [vmem:[#allocation37_spill] sm:$0xff] %v3286_v3 }
  0xf6   : > { %1273 = vmatprep.mubr.f32.mxu0 %v4258_v0  ;;  %1530 = vmatprep.mubr.f32.mxu1 %v4258_v0  ;;  %v3244_v5 = vpop.permute.xlu0 %426  ;;  %v3246_v41 = vpop.permute.xlu1 %431  ;;  %v3330_v2 = vadd.f32 %v916_v34, %v3092_v22  ;;  %v1628_v54 = vmax.f32 %v656_v59, 0.0 }
  0xf7   : > { %v661_v35 = vpop.f32.mrf.mxu0  ;;  %v918_v36 = vpop.f32.mrf.mxu1  ;;  %4352 = vst [vmem:[#allocation31_spill] sm:$0xff] %v3244_v5  ;;  %4353 = vst [vmem:[#allocation32_spill] sm:$0xff] %v3246_v41 }
  0xf8   : > { %v662_v32 = vadd.f32 %v661_v35, %v3092_v22  ;;  %v3308_v35 = vadd.f32 %v3200_v56, %v3108_v24  ;;  %4363 = vst [vmem:[#allocation42_spill] sm:$0xff] %v3330_v2 }
  0xf9   : > { %v3234_v37 = vpop.f32.mrf.mxu0  ;;  %v3236_v38 = vpop.f32.mrf.mxu1  ;;  %2378 = vmatmul.mubr.msk.f32.gmra.mxu0 %vm454_vm0, %v2917_v6  ;;  %2410 = vmatmul.mubr.msk.f32.gmra.mxu1 %vm454_vm0, %v2917_v6 }
  0xfa   : > { %1279 = vmatprep.mubr.f32.mxu0 %v4258_v0  ;;  %1536 = vmatprep.mubr.f32.mxu1 %v4258_v0  ;;  %v3258_v48 = vpop.permute.xlu0 %416  ;;  %v1636_v56 = vmax.f32 %v662_v32, 0.0 }
  0xfb   : > { %v667_v39 = vpop.f32.mrf.mxu0  ;;  %v924_v40 = vpop.f32.mrf.mxu1  ;;  %4354 = vst [vmem:[#allocation33_spill] sm:$0xff] %v3258_v48  ;;  %v3311_v48 = vadd.f32 %v912_v31, %v3090_v21  ;;  %v3333_v31 = vadd.f32 %v918_v36, %v3092_v22 }
  0xfc   : > { %v3347_v36 = vadd.f32 %v667_v39, %v3074_v19 }
  0xfd   : > { %v3248_v42 = vpop.f32.mrf.mxu0  ;;  %v3250_v43 = vpop.f32.mrf.mxu1  ;;  %2379 = vmatmul.mubr.msk.f32.gmra.mxu0 %vm454_vm0, %v2928_v7  ;;  %2411 = vmatmul.mubr.msk.f32.gmra.mxu1 %vm454_vm0, %v2928_v7 }
  0xfe   : > { %1285 = vmatprep.mubr.f32.mxu0 %v4258_v0  ;;  %1542 = vmatprep.mubr.f32.mxu1 %v4258_v0  ;;  %v3268_v7 = vpop.permute.xlu1 %421  ;;  %v3283_v57 = vpop.permute.xlu0 %406 }
  0xff   : > { %v673_v6 = vpop.f32.mrf.mxu0  ;;  %v930_v63 = vpop.f32.mrf.mxu1  ;;  %4355 = vst [vmem:[#allocation34_spill] sm:$0xff] %v3268_v7  ;;  %4357 = vst [vmem:[#allocation36_spill] sm:$0xff] %v3283_v57 }
 0x100   : > { %v3361_v32 = vadd.f32 %v930_v63, %v3082_v20 }
 0x101   : > { %v677_v49 = vpop.f32.mrf.mxu0  ;;  %v3260_v26 = vpop.f32.mrf.mxu1  ;;  %2380 = vmatmul.mubr.msk.f32.gmra.mxu0 %vm454_vm0, %v2939_v8  ;;  %2412 = vmatmul.mubr.msk.f32.gmra.mxu1 %vm454_vm0, %v2939_v8  ;;  %v3279_v8 = vadd.f32 %v649_v58, %v3108_v24  ;;  %v3297_v58 = vadd.f32 %v3192_v50, %v3100_v23 }
 0x102   : > { %1291 = vmatprep.mubr.f32.mxu0 %v4258_v0  ;;  %1548 = vmatprep.mubr.f32.mxu1 %v4258_v0  ;;  %v3304_v7 = vpop.permute.xlu1 %411  ;;  %v3353_v53 = vpop.permute.xlu0 %396  ;;  %v3372_v28 = vadd.f32 %v677_v49, %v3064_v17 }
 0x103   : > { %v679_v25 = vpop.f32.mrf.mxu0  ;;  %v936_v30 = vpop.f32.mrf.mxu1  ;;  %4356 = vst [vmem:[#allocation35_spill] sm:$0xff] %v3279_v8  ;;  %4360 = vst [vmem:[#allocation39_spill] sm:$0xff] %v3304_v7 }
 0x104   : > { %4365 = vst [vmem:[#allocation43_spill] sm:$0xff] %v3353_v53 }
 0x105   : > { %v3270_v27 = vpop.f32.mrf.mxu0  ;;  %v3272_v60 = vpop.f32.mrf.mxu1  ;;  %2381 = vmatmul.mubr.msk.f32.gmra.mxu0 %vm454_vm0, %v2950_v9  ;;  %2413 = vmatmul.mubr.msk.f32.gmra.mxu1 %vm454_vm0, %v2950_v9  ;;  %v3293_v9 = vadd.f32 %v3178_v44, %v3100_v23  ;;  %v3314_v44 = vadd.f32 %v659_v33, %v3092_v22  ;;  %v4364_v33 = vmov 0.0   ;;  %v3350_v22 = vadd.f32 %v924_v40, %v3074_v19 }
 0x106   : > { %1297 = vmatprep.mubr.f32.mxu0 %v4258_v0  ;;  %1554 = vmatprep.mubr.f32.mxu1 %v4258_v0  ;;  %v3301_v0 = vadd.f32 %v3194_v51, %v3100_v23  ;;  %v3326_v51 = vadd.f32 %v3202_v1, %v3108_v24  ;;  %v3344_v1 = vadd.f32 %v3216_v29, %v3090_v21  ;;  %v3377_v63 = vpop.permute.xlu1 %401 }
 0x107   : > { %v685_v5 = vpop.f32.mrf.mxu0  ;;  %v3289_v41 = vpop.f32.mrf.mxu1  ;;  %4359 = vst [vmem:[#allocation38_spill] sm:$0xff] %v3293_v9  ;;  %4361 = vst [vmem:[#allocation40_spill] sm:$0xff] %v3314_v44  ;;  %v3358_v29 = vadd.f32 %v673_v6, %v3082_v20  ;;  %v680_v6 = vadd.f32 %v679_v25, %v3064_v17  ;;  %v3390_v25 = vpack.c.bf16 %v1636_v56, %v1628_v54 }
 0x108   : > { %4362 = vst [vmem:[#allocation41_spill] sm:$0xff] %v3326_v51  ;;  %v686_v7 = vadd.f32 %v685_v5, %v3066_v18  ;;  %4366 = vst [vmem:[#allocation44_spill] sm:$0xff] %v3377_v63  ;;  %v3388_v5 = vadd.f32 %v936_v30, %v3064_v17  ;;  %v3396_v63 = vadd.f32 %v3248_v42, %v3082_v20 }
 0x109   : > { %v3316_v50 = vpop.f32.mrf.mxu0  ;;  %v3318_v57 = vpop.f32.mrf.mxu1  ;;  %2382 = vmatmul.mubr.msk.f32.gmra.mxu0 %vm454_vm0, %v2961_v10  ;;  %2414 = vmatmul.mubr.msk.f32.gmra.mxu1 %vm454_vm0, %v2961_v10  ;;  %v3340_v10 = vadd.f32 %v3214_v62, %v3090_v21  ;;  %v3381_v62 = vadd.f32 %v3234_v37, %v3074_v19  ;;  %v3406_v54 = vadd.f32 %v3270_v27, %v3066_v18 }
 0x10a   : > { %1303 = vmatprep.mubr.f32.mxu0 %v4364_v33  ;;  %1560 = vmatprep.mubr.f32.mxu1 %v4364_v33  ;;  %v1668_v37 = vmax.f32 %v686_v7, 0.0  ;;  %v1660_v7 = vmax.f32 %v680_v6, 0.0  ;;  %v3423_v27 = vpop.permute.xlu0 %386 }
 0x10b   : > { %v691_v34 = vpop.f32.mrf.mxu0  ;;  %v948_v24 = vpop.f32.mrf.mxu1  ;;  %4367 = vst [vmem:[#allocation45_spill] sm:$0xff] %v3423_v27 }
 0x10c   : > { %v949_v6 = vadd.f32 %v948_v24, %v3040_v13 }
 0x10d   : > { %v695_v59 = vpop.f32.mrf.mxu0  ;;  %v3363_v39 = vpop.f32.mrf.mxu1  ;;  %2383 = vmatmul.mubr.msk.f32.gmra.mxu0 %vm454_vm0, %v2972_v11  ;;  %2415 = vmatmul.mubr.msk.f32.gmra.mxu1 %vm454_vm0, %v2972_v11  ;;  %v3385_v11 = vadd.f32 %v3236_v38, %v3074_v19  ;;  %v3400_v38 = vadd.f32 %v3250_v43, %v3082_v20  ;;  %v3415_v43 = vadd.f32 %v3260_v26, %v3064_v17 }
 0x10e   : > { %1309 = vmatprep.mubr.f32.mxu0 %v4364_v33  ;;  %1566 = vmatprep.mubr.f32.mxu1 %v4364_v33  ;;  %v3419_v19 = vadd.f32 %v3272_v60, %v3066_v18  ;;  %v3433_v26 = vadd.f32 %v3289_v41, %v3066_v18  ;;  %v692_v60 = vadd.f32 %v691_v34, %v3040_v13  ;;  %v3446_v20 = vpop.permute.xlu1 %391  ;;  %v3472_v46 = vpop.permute.xlu0 %376 }
 0x10f   : > { %v697_v49 = vpop.f32.mrf.mxu0  ;;  %v954_v40 = vpop.f32.mrf.mxu1  ;;  %v3443_v17 = vadd.f32 %v3318_v57, %v3040_v13  ;;  %4369 = vst [vmem:[#allocation47_spill] sm:$0xff] %v3446_v20  ;;  %v3448_v41 = vpack.c.bf16 %v1668_v37, %v1660_v7  ;;  %v3452_v24 = vadd.f32 %v695_v59, %v3056_v16  ;;  %v953_v57 = vadd.f32 %v3363_v39, %v3056_v16 }
 0x110   : > { %v698_v53 = vadd.f32 %v697_v49, %v3056_v16  ;;  %v955_v18 = vadd.f32 %v954_v40, %v3056_v16  ;;  %v1676_v40 = vmax.f32 %v692_v60, 0.0  ;;  %4370 = vst [vmem:[#allocation48_spill] sm:$0xff] %v3472_v46 }
 0x111   : > { %v701_v56 = vpop.f32.mrf.mxu0  ;;  %v958_v21 = vpop.f32.mrf.mxu1  ;;  %2384 = vmatmul.mubr.msk.f32.gmra.mxu0 %vm454_vm0, %v2983_v12  ;;  %2416 = vmatmul.mubr.msk.f32.gmra.mxu1 %vm454_vm0, %v2983_v12  ;;  %v3428_v12 = vld [vmem:[%s4241_s3 + $0x4] ss:$8 sps:$4 sm:$0xff]  }
 0x112   : > { %1315 = vmatprep.mubr.f32.mxu0 %v4364_v33  ;;  %1572 = vmatprep.mubr.f32.mxu1 %v4364_v33  ;;  %4368 = vst [vmem:[#allocation46_spill] sm:$0xff] %v3428_v12  ;;  %v3439_v33 = vadd.f32 %v3316_v50, %v3040_v13  ;;  %v702_v7 = vadd.f32 %v701_v56, %v3038_v4  ;;  %v1686_v60 = vmax.f32 %v955_v18, 0.0  ;;  %v3475_v8 = vpop.permute.xlu1 %381 }
 0x113   : > { %v703_v30 = vpop.f32.mrf.mxu0  ;;  %v960_v42 = vpop.f32.mrf.mxu1  ;;  %v959_v34 = vadd.f32 %v958_v21, %v3038_v4  ;;  %4371 = vst [vmem:[#allocation49_spill] sm:$0xff] %v3475_v8 }
 0x114   : > { %v704_v50 = vadd.f32 %v703_v30, %v3038_v4  ;;  %v961_v49 = vadd.f32 %v960_v42, %v3038_v4  ;;  %v1678_v30 = vmax.f32 %v949_v6, 0.0  ;;  %v1684_v42 = vmax.f32 %v698_v53, 0.0 }
 0x115   : > { %v707_v61 = vpop.f32.mrf.mxu0  ;;  %v964_v47 = vpop.f32.mrf.mxu1  ;;  %2385 = vmatmul.mubr.msk.f32.gmra.mxu0 %vm454_vm0, %v2994_v14  ;;  %2417 = vmatmul.mubr.msk.f32.gmra.mxu1 %vm454_vm0, %v2994_v14  ;;  %v1691_v53 = vmax.f32 %v702_v7, 0.0  ;;  %v1693_v39 = vmax.f32 %v959_v34, 0.0  ;;  %v1670_v34 = vmax.f32 %v3433_v26, 0.0 }
 0x116   : > { %v708_v37 = vadd.f32 %v707_v61, %v3048_v15  ;;  %v965_v59 = vadd.f32 %v964_v47, %v3048_v15  ;;  %2019 = vmatprep.mubr.bf16.mxu0 %v3428_v12  ;;  %2062 = vmatprep.mubr.bf16.mxu1 %v3428_v12  ;;  %v1683_v12 = vmax.f32 %v3452_v24, 0.0  ;;  %v1692_v21 = vmax.f32 %v704_v50, 0.0 }
 0x117   : > { %v709_v13 = vpop.f32.mrf.mxu0  ;;  %v966_v14 = vpop.f32.mrf.mxu1  ;;  %v1694_v4 = vmax.f32 %v961_v49, 0.0  ;;  %v1685_v24 = vmax.f32 %v953_v57, 0.0  ;;  %v1886_v18 = vpack.c.bf16 %v1684_v42, %v1676_v40  ;;  %v1888_v7 = vpack.c.bf16 %v1686_v60, %v1678_v30 }
 0x118   : > { %v710_v61 = vadd.f32 %v709_v13, %v3048_v15  ;;  %v967_v47 = vadd.f32 %v966_v14, %v3048_v15  ;;  %v1699_v6 = vmax.f32 %v708_v37, 0.0  ;;  %v1701_v55 = vmax.f32 %v965_v59, 0.0 }
 0x119   : > { %v713_v56 = vpop.f32.mrf.mxu0  ;;  %v970_v52 = vpop.f32.mrf.mxu1 }
 0x11a   : > { %v1700_v9 = vmax.f32 %v710_v61, 0.0  ;;  %v1702_v3 = vmax.f32 %v967_v47, 0.0  ;;  %v714_v14 = vadd.f32 %v713_v56, %v3472_v46  ;;  %v971_v15 = vadd.f32 %v970_v52, %v3472_v46 }
 0x11b   : > { %v715_v13 = vpop.f32.mrf.mxu0  ;;  %v972_v16 = vpop.f32.mrf.mxu1  ;;  %v1893_v2 = vpack.c.bf16 %v1699_v6, %v1691_v53  ;;  %v1895_v44 = vpack.c.bf16 %v1701_v55, %v1693_v39  ;;  %v1675_v52 = vmax.f32 %v3439_v33, 0.0 }
 0x11c   : > { %v1894_v37 = vpack.c.bf16 %v1700_v9, %v1692_v21  ;;  %v1896_v59 = vpack.c.bf16 %v1702_v3, %v1694_v4  ;;  %v716_v50 = vadd.f32 %v715_v13, %v3472_v46  ;;  %v973_v49 = vadd.f32 %v972_v16, %v3472_v46  ;;  %v4419_v46 = vld [vmem:[#allocation29_spill] sm:$0xff] }
 0x11d   : > { %v719_v61 = vpop.f32.mrf.mxu0  ;;  %v976_v47 = vpop.f32.mrf.mxu1  ;;  %v1677_v4 = vmax.f32 %v3443_v17, 0.0  ;;  %v1707_v55 = vmax.f32 %v714_v14, 0.0  ;;  %v1709_v3 = vmax.f32 %v971_v15, 0.0  ;;  %v1885_v42 = vpack.c.bf16 %v1683_v12, %v1675_v52 }
 0x11e   : > { %v720_v51 = vadd.f32 %v719_v61, %v3475_v8  ;;  %v977_v56 = vadd.f32 %v976_v47, %v3475_v8  ;;  %1987 = vmatprep.subr.bf16.mxu0 %v1894_v37  ;;  %2030 = vmatprep.subr.bf16.mxu1 %v1896_v59  ;;  %v1708_v6 = vmax.f32 %v716_v50, 0.0  ;;  %v1710_v33 = vmax.f32 %v973_v49, 0.0 }
 0x11f   : > { %v721_v9 = vpop.f32.mrf.mxu0  ;;  %v978_v57 = vpop.f32.mrf.mxu1  ;;  %1988 = vmatpush1.bf16.msra.mxu0 %v1893_v2  ;;  %2031 = vmatpush1.bf16.msra.mxu1 %v1895_v44  ;;  %v1887_v60 = vpack.c.bf16 %v1685_v24, %v1677_v4  ;;  %v4374_v12 = vmax.f32 %v3388_v5, 0.0  ;;  %v1651_v37 = vmax.f32 %v3396_v63, 0.0  ;;  %v1653_v59 = vmax.f32 %v3400_v38, 0.0 }
 0x120   : > { %v1715_v16 = vmax.f32 %v720_v51, 0.0  ;;  %v1717_v40 = vmax.f32 %v977_v56, 0.0  ;;  %v722_v26 = vadd.f32 %v721_v9, %v3475_v8  ;;  %v979_v30 = vadd.f32 %v978_v57, %v3475_v8  ;;  %1989 = vmatprep.subr.bf16.mxu0 %v1886_v18  ;;  %2032 = vmatprep.subr.bf16.mxu1 %v1888_v7 }
 0x121   : > { %v725_v21 = vpop.f32.mrf.mxu0  ;;  %v982_v17 = vpop.f32.mrf.mxu1  ;;  %v1661_v51 = vmax.f32 %v3415_v43, 0.0  ;;  %v1880_v24 = vpack.c.bf16 %v1670_v34, %v4374_v12  ;;  %v4377_v43 = vmax.f32 %v3372_v28, 0.0  ;;  %v4378_v61 = vmax.f32 %v3406_v54, 0.0 }
 0x122   : > { %v3488_v53 = vpack.c.bf16 %v1715_v16, %v1707_v55  ;;  %v3490_v15 = vpack.c.bf16 %v1717_v40, %v1709_v3  ;;  %v1716_v2 = vmax.f32 %v722_v26, 0.0  ;;  %v1718_v44 = vmax.f32 %v979_v30, 0.0 }
 0x123   : > { %v726_v39 = vadd.f32 %v725_v21, %v3423_v27  ;;  %v983_v13 = vadd.f32 %v982_v17, %v3423_v27  ;;  %v727_v14 = vpop.f32.mrf.mxu0  ;;  %v984_v18 = vpop.f32.mrf.mxu1  ;;  %1990 = vmatpush1.bf16.msra.mxu0 %v1885_v42  ;;  %2033 = vmatpush1.bf16.msra.mxu1 %v1887_v60  ;;  %v1877_v47 = vpack.c.bf16 %v4378_v61, %v4377_v43  ;;  %v4379_v7 = vmax.f32 %v3419_v19, 0.0  ;;  %v4390_v61 = vld [vmem:[#allocation41_spill] sm:$0xff] }
 0x124   : > { %4372 = vst [vmem:[#allocation50_spill] sm:$0xff] %v3488_v53  ;;  %4373 = vst [vmem:[#allocation51_spill] sm:$0xff] %v3490_v15  ;;  %v3499_v50 = vpack.c.bf16 %v1716_v2, %v1708_v6  ;;  %v3501_v49 = vpack.c.bf16 %v1718_v44, %v1710_v33  ;;  %1991 = vmatprep.subr.bf16.mxu0 %v3448_v41  ;;  %v728_v5 = vadd.f32 %v727_v14, %v3423_v27  ;;  %v4421_v15 = vld [vmem:[#allocation27_spill] sm:$0xff] }
 0x125   : > { %v1879_v56 = vpack.c.bf16 %v4379_v7, %v1661_v51  ;;  %v985_v63 = vadd.f32 %v984_v18, %v3423_v27  ;;  %2034 = vmatprep.subr.bf16.mxu1 %v1880_v24  ;;  %v731_v38 = vpop.f32.mrf.mxu0  ;;  %v988_v34 = vpop.f32.mrf.mxu1  ;;  %v4380_v41 = vmax.f32 %v3347_v36, 0.0  ;;  %v4381_v28 = vmax.f32 %v3358_v29, 0.0  ;;  %v4391_v7 = vld [vmem:[#allocation40_spill] sm:$0xff] }
 0x126   : > { %4375 = vst [vmem:[#allocation52_spill] sm:$0xff] %v3499_v50  ;;  %4376 = vst [vmem:[#allocation53_spill] sm:$0xff] %v3501_v49  ;;  %v732_v52 = vadd.f32 %v731_v38, %v3446_v20  ;;  %v989_v4 = vadd.f32 %v988_v34, %v3446_v20  ;;  %v4382_v55 = vmax.f32 %v3350_v22, 0.0  ;;  %v4383_v19 = vmax.f32 %v3361_v32, 0.0 }
 0x127   : > { %v1870_v54 = vpack.c.bf16 %v4381_v28, %v4380_v41  ;;  %v1643_v9 = vmax.f32 %v3381_v62, 0.0  ;;  %v1645_v57 = vmax.f32 %v3385_v11, 0.0  ;;  %v1723_v16 = vmax.f32 %v726_v39, 0.0  ;;  %v733_v26 = vpop.f32.mrf.mxu0  ;;  %v990_v30 = vpop.f32.mrf.mxu1  ;;  %1992 = vmatpush1.bf16.msra.mxu0 %v1877_v47  ;;  %2035 = vmatpush1.bf16.msra.mxu1 %v1879_v56 }
 0x128   : > { %v1872_v3 = vpack.c.bf16 %v4383_v19, %v4382_v55  ;;  %v1725_v40 = vmax.f32 %v983_v13, 0.0  ;;  %v1731_v42 = vmax.f32 %v732_v52, 0.0  ;;  %v1733_v36 = vmax.f32 %v989_v4, 0.0  ;;  %v4397_v4 = vld [vmem:[#allocation37_spill] sm:$0xff] }
 0x129   : > { %v734_v29 = vadd.f32 %v733_v26, %v3446_v20  ;;  %v991_v60 = vadd.f32 %v990_v30, %v3446_v20  ;;  %1993 = vmatprep.subr.bf16.mxu0 %v1870_v54  ;;  %v1869_v22 = vpack.c.bf16 %v1651_v37, %v1643_v9  ;;  %v1871_v32 = vpack.c.bf16 %v1653_v59, %v1645_v57  ;;  %v3526_v33 = vpop.f32.mrf.mxu0  ;;  %v3528_v11 = vpop.f32.mrf.mxu1  ;;  %v4400_v30 = vld [vmem:[#allocation25_spill] sm:$0xff] }
 0x12a   : > { %2036 = vmatprep.subr.bf16.mxu1 %v1872_v3  ;;  %v1724_v6 = vmax.f32 %v728_v5, 0.0  ;;  %v1726_v62 = vmax.f32 %v985_v63, 0.0  ;;  %v3530_v21 = vpack.c.bf16 %v1731_v42, %v1723_v16  ;;  %v3532_v17 = vpack.c.bf16 %v1733_v36, %v1725_v40  ;;  %v4393_v5 = vld [vmem:[#allocation42_spill] sm:$0xff] }
 0x12b   : > { %v1732_v2 = vmax.f32 %v734_v29, 0.0  ;;  %v1734_v44 = vmax.f32 %v991_v60, 0.0  ;;  %v899_v51 = vadd.f32 %v3180_v45, %v3100_v23  ;;  %v1627_v39 = vmax.f32 %v3340_v10, 0.0  ;;  %v3538_v14 = vpop.f32.mrf.mxu0  ;;  %v3540_v18 = vpop.f32.mrf.mxu1  ;;  %1994 = vmatpush1.bf16.msra.mxu0 %v1869_v22  ;;  %2037 = vmatpush1.bf16.msra.mxu1 %v1871_v32  ;;  %v4401_v42 = vld [vmem:[#allocation26_spill] sm:$0xff]  ;;  %v4402_v32 = vld [vmem:[#allocation23_spill] sm:$0xff] }
 0x12c   : > { %4384 = vst [vmem:[#allocation54_spill] sm:$0xff] %v3530_v21  ;;  %4385 = vst [vmem:[#allocation55_spill] sm:$0xff] %v3532_v17  ;;  %v1629_v13 = vmax.f32 %v3344_v1, 0.0  ;;  %v4386_v12 = vmax.f32 %v3311_v48, 0.0  ;;  %v4387_v24 = vmax.f32 %v3333_v31, 0.0  ;;  %v1612_v59 = vmax.f32 %v3297_v58, 0.0  ;;  %1995 = vmatprep.subr.bf16.mxu0 %v3390_v25 }
 0x12d   : > { %v1614_v43 = vmax.f32 %v3301_v0, 0.0  ;;  %v3548_v45 = vpack.c.bf16 %v1732_v2, %v1724_v6  ;;  %v3550_v10 = vpack.c.bf16 %v1734_v44, %v1726_v62  ;;  %v1619_v1 = vmax.f32 %v3308_v35, 0.0  ;;  %v743_v58 = vpop.f32.mrf.mxu0  ;;  %v1000_v38 = vpop.f32.mrf.mxu1  ;;  %v4395_v0 = vld [vmem:[#allocation35_spill] sm:$0xff]  ;;  %v4399_v25 = vld [vmem:[#allocation38_spill] sm:$0xff]  ;;  %v4403_v6 = vld [vmem:[#allocation24_spill] sm:$0xff] }
 0x12e   : > { %v1864_v37 = vpack.c.bf16 %v4387_v24, %v4386_v12  ;;  %v1621_v47 = vmax.f32 %v4390_v61, 0.0  ;;  %v4392_v56 = vmax.f32 %v4391_v7, 0.0  ;;  %v4394_v31 = vmax.f32 %v4393_v5, 0.0  ;;  %v4404_v62 = vld [vmem:[#allocation21_spill] sm:$0xff]  ;;  %v4405_v2 = vld [vmem:[#allocation22_spill] sm:$0xff]  ;;  %v4406_v12 = vld [vmem:[#allocation19_spill] sm:$0xff] }
 0x12f   : > { %4388 = vst [vmem:[#allocation56_spill] sm:$0xff] %v3548_v45  ;;  %4389 = vst [vmem:[#allocation57_spill] sm:$0xff] %v3550_v10  ;;  %v4396_v34 = vmax.f32 %v4395_v0, 0.0  ;;  %v4398_v41 = vmax.f32 %v4397_v4, 0.0  ;;  %v1611_v54 = vmax.f32 %v4399_v25, 0.0  ;;  %v1613_v35 = vmax.f32 %v899_v51, 0.0  ;;  %v745_v55 = vpop.f32.mrf.mxu0  ;;  %v1002_v19 = vpop.f32.mrf.mxu1 }
 0x130   : > { %v1861_v48 = vpack.c.bf16 %v4392_v56, %v1627_v39  ;;  %v1863_v63 = vpack.c.bf16 %v4394_v31, %v1629_v13  ;;  %2038 = vmatprep.subr.bf16.mxu1 %v1864_v37  ;;  %v4407_v24 = vld [vmem:[#allocation20_spill] sm:$0xff] }
 0x131   : > { %v1854_v52 = vpack.c.bf16 %v4396_v34, %v1612_v59  ;;  %v1856_v28 = vpack.c.bf16 %v4398_v41, %v1614_v43  ;;  %v1853_v3 = vpack.c.bf16 %v1619_v1, %v1611_v54  ;;  %v1855_v9 = vpack.c.bf16 %v1621_v47, %v1613_v35  ;;  %v749_v57 = vpop.f32.mrf.mxu0  ;;  %v1006_v16 = vpop.f32.mrf.mxu1  ;;  %v4408_v31 = vld [vmem:[#allocation44_spill] sm:$0xff]  ;;  %v4414_v35 = vld [vmem:[#allocation39_spill] sm:$0xff] }
 0x132   : > { %1996 = vmatpush1.bf16.msra.mxu0 %v1861_v48  ;;  %2039 = vmatpush1.bf16.msra.mxu1 %v1863_v63  ;;  %v3573_v63 = vadd.f32 %v745_v55, %v4408_v31  ;;  %v3576_v0 = vadd.f32 %v1002_v19, %v4408_v31  ;;  %v4411_v34 = vld [vmem:[#allocation36_spill] sm:$0xff] }
 0x133   : > { %1997 = vmatprep.subr.bf16.mxu0 %v1854_v52  ;;  %2040 = vmatprep.subr.bf16.mxu1 %v1856_v28  ;;  %v751_v40 = vpop.f32.mrf.mxu0  ;;  %v1008_v26 = vpop.f32.mrf.mxu1  ;;  %v4412_v28 = vld [vmem:[#allocation43_spill] sm:$0xff] }
 0x134   : > { %4409 = vst [vmem:[#allocation41_spill] sm:$0xff] %v3573_v63  ;;  %4410 = vst [vmem:[#allocation40_spill] sm:$0xff] %v3576_v0  ;;  %v752_v52 = vadd.f32 %v751_v40, %v4411_v34  ;;  %v3581_v25 = vadd.f32 %v3526_v33, %v4412_v28  ;;  %v3584_v54 = vadd.f32 %v1008_v26, %v4411_v34  ;;  %v4423_v0 = vld [vmem:[#allocation17_spill] sm:$0xff] }
 0x135   : > { %v755_v36 = vpop.f32.mrf.mxu0  ;;  %v1012_v29 = vpop.f32.mrf.mxu1  ;;  %v3589_v55 = vadd.f32 %v3538_v14, %v4412_v28  ;;  %v3593_v19 = vadd.f32 %v3540_v18, %v4412_v28  ;;  %v3602_v26 = vadd.f32 %v743_v58, %v4408_v31  ;;  %v4416_v18 = vld [vmem:[#allocation34_spill] sm:$0xff] }
 0x136   : > { %1998 = vmatpush1.bf16.msra.mxu0 %v1853_v3  ;;  %2041 = vmatpush1.bf16.msra.mxu1 %v1855_v9  ;;  %4413 = vst [vmem:[#allocation42_spill] sm:$0xff] %v3581_v25  ;;  %v3596_v9 = vadd.f32 %v755_v36, %v4414_v35  ;;  %v3599_v40 = vadd.f32 %v1012_v29, %v4414_v35 }
 0x137   : > { %1999 = vmatprep.subr.bf16.mxu0 %v4400_v30  ;;  %2042 = vmatprep.subr.bf16.mxu1 %v4401_v42  ;;  %v757_v60 = vpop.f32.mrf.mxu0  ;;  %v1014_v22 = vpop.f32.mrf.mxu1  ;;  %v3605_v42 = vadd.f32 %v1000_v38, %v4408_v31  ;;  %v3613_v36 = vadd.f32 %v749_v57, %v4411_v34  ;;  %v3616_v29 = vadd.f32 %v1006_v16, %v4411_v34  ;;  %v4417_v16 = vld [vmem:[#allocation32_spill] sm:$0xff] }
 0x138   : > { %v758_v3 = vadd.f32 %v757_v60, %v4414_v35  ;;  %v3609_v60 = vadd.f32 %v1014_v22, %v4414_v35 }
 0x139   : > { %v761_v44 = vpop.f32.mrf.mxu0  ;;  %v1018_v51 = vpop.f32.mrf.mxu1 }
 0x13a   : > { %2000 = vmatpush1.bf16.msra.mxu0 %v4402_v32  ;;  %2043 = vmatpush1.bf16.msra.mxu1 %v4403_v6  ;;  %v1756_v32 = vmax.f32 %v752_v52, 0.0  ;;  %v1764_v38 = vmax.f32 %v758_v3, 0.0 }
 0x13b   : > { %2001 = vmatprep.subr.bf16.mxu0 %v4404_v62  ;;  %2044 = vmatprep.subr.bf16.mxu1 %v4405_v2  ;;  %v763_v39 = vpop.f32.mrf.mxu0  ;;  %v1020_v13 = vpop.f32.mrf.mxu1  ;;  %v4415_v2 = vld [vmem:[#allocation33_spill] sm:$0xff] }
 0x13c   : > { %v3623_v22 = vadd.f32 %v1020_v13, %v4415_v2  ;;  %v3651_v20 = vpack.c.bf16 %v1764_v38, %v1756_v32 }
 0x13d   : > { %v767_v37 = vpop.f32.mrf.mxu0  ;;  %v1024_v59 = vpop.f32.mrf.mxu1 }
 0x13e   : > { %2002 = vmatpush1.bf16.msra.mxu0 %v4406_v12  ;;  %2045 = vmatpush1.bf16.msra.mxu1 %v4407_v24  ;;  %v3620_v12 = vadd.f32 %v763_v39, %v4415_v2  ;;  %v4418_v39 = vld [vmem:[#allocation31_spill] sm:$0xff]  ;;  %v3640_v24 = vadd.f32 %v761_v44, %v4415_v2 }
 0x13f   : > { %v769_v43 = vpop.f32.mrf.mxu0  ;;  %v1026_v1 = vpop.f32.mrf.mxu1 }
 0x140   : > { %v3628_v14 = vadd.f32 %v769_v43, %v4416_v18  ;;  %v3633_v3 = vadd.f32 %v1026_v1, %v4416_v18  ;;  %v3643_v43 = vadd.f32 %v1018_v51, %v4415_v2  ;;  %v3659_v51 = vadd.f32 %v767_v37, %v4416_v18 }
 0x141   : > { %v773_v61 = vpop.f32.mrf.mxu0  ;;  %v1030_v47 = vpop.f32.mrf.mxu1 }
 0x142   : > { %v3636_v31 = vadd.f32 %v773_v61, %v4418_v39 }
 0x143   : > { %v775_v7 = vpop.f32.mrf.mxu0  ;;  %v1032_v56 = vpop.f32.mrf.mxu1 }
 0x144   : > { %v776_v13 = vadd.f32 %v775_v7, %v4418_v39  ;;  %v3668_v7 = vadd.f32 %v1030_v47, %v4418_v39  ;;  %v4420_v47 = vld [vmem:[#allocation30_spill] sm:$0xff] }
 0x145   : > { %v779_v48 = vpop.f32.mrf.mxu0  ;;  %v1036_v5 = vpop.f32.mrf.mxu1 }
 0x146   : > { %v3649_v57 = vadd.f32 %v779_v48, %v4417_v16  ;;  %v3656_v44 = vadd.f32 %v1036_v5, %v4417_v16  ;;  %v1788_v5 = vmax.f32 %v776_v13, 0.0 }
 0x147   : > { %v781_v4 = vpop.f32.mrf.mxu0  ;;  %v1038_v41 = vpop.f32.mrf.mxu1 }
 0x148   : > { %v782_v52 = vadd.f32 %v781_v4, %v4417_v16  ;;  %v3646_v4 = vadd.f32 %v1032_v56, %v4418_v39  ;;  %v3662_v56 = vadd.f32 %v1024_v59, %v4416_v18  ;;  %v3676_v32 = vadd.f32 %v1038_v41, %v4417_v16 }
 0x149   : > { %v785_v33 = vpop.f32.mrf.mxu0  ;;  %v1042_v30 = vpop.f32.mrf.mxu1 }
 0x14a   : > { %v1796_v2 = vmax.f32 %v782_v52, 0.0  ;;  %v3679_v38 = vadd.f32 %v785_v33, %v4419_v46  ;;  %v3685_v37 = vadd.f32 %v1042_v30, %v4419_v46  ;;  %v4422_v33 = vld [vmem:[#allocation28_spill] sm:$0xff] }
 0x14b   : > { %v787_v6 = vpop.f32.mrf.mxu0  ;;  %v1044_v58 = vpop.f32.mrf.mxu1 }
 0x14c   : > { %v788_v59 = vadd.f32 %v787_v6, %v4419_v46  ;;  %v1045_v18 = vadd.f32 %v1044_v58, %v4419_v46  ;;  %v3682_v39 = vpack.c.bf16 %v1796_v2, %v1788_v5 }
 0x14d   : > { %v791_v35 = vpop.f32.mrf.mxu0  ;;  %v1048_v34 = vpop.f32.mrf.mxu1 }
 0x14e   : > { %v3688_v6 = vadd.f32 %v791_v35, %v4420_v47  ;;  %v1804_v2 = vmax.f32 %v788_v59, 0.0  ;;  %v1806_v5 = vmax.f32 %v1045_v18, 0.0 }
 0x14f   : > { %v793_v62 = vpop.f32.mrf.mxu0  ;;  %v1050_v1 = vpop.f32.mrf.mxu1 }
 0x150   : > { %v794_v13 = vadd.f32 %v793_v62, %v4420_v47  ;;  %v1051_v58 = vadd.f32 %v1050_v1, %v4420_v47  ;;  %v1049_v1 = vadd.f32 %v1048_v34, %v4420_v47 }
 0x151   : > { %v797_v27 = vpop.f32.mrf.mxu0  ;;  %v1054_v8 = vpop.f32.mrf.mxu1 }
 0x152   : > { %v798_v30 = vadd.f32 %v797_v27, %v4421_v15  ;;  %v1055_v46 = vadd.f32 %v1054_v8, %v4421_v15  ;;  %v1812_v50 = vmax.f32 %v794_v13, 0.0 }
 0x153   : > { %v799_v48 = vpop.f32.mrf.mxu0  ;;  %v1056_v52 = vpop.f32.mrf.mxu1 }
 0x154   : > { %v800_v41 = vadd.f32 %v799_v48, %v4421_v15  ;;  %v1057_v16 = vadd.f32 %v1056_v52, %v4421_v15  ;;  %v1811_v52 = vmax.f32 %v3688_v6, 0.0  ;;  %v1819_v15 = vmax.f32 %v798_v30, 0.0 }
 0x155   : > { %v803_v61 = vpop.f32.mrf.mxu0  ;;  %v1060_v23 = vpop.f32.mrf.mxu1  ;;  %v1821_v25 = vmax.f32 %v1055_v46, 0.0  ;;  %v1798_v46 = vmax.f32 %v3676_v32, 0.0 }
 0x156   : > { %v804_v53 = vadd.f32 %v803_v61, %v4422_v33  ;;  %v1061_v62 = vadd.f32 %v1060_v23, %v4422_v33  ;;  %v1814_v61 = vmax.f32 %v1051_v58, 0.0  ;;  %v1820_v10 = vmax.f32 %v800_v41, 0.0 }
 0x157   : > { %v805_v35 = vpop.f32.mrf.mxu0  ;;  %v1062_v49 = vpop.f32.mrf.mxu1  ;;  %v1822_v27 = vmax.f32 %v1057_v16, 0.0 }
 0x158   : > { %v806_v17 = vadd.f32 %v805_v35, %v4422_v33  ;;  %v1063_v48 = vadd.f32 %v1062_v49, %v4422_v33  ;;  %v1827_v21 = vmax.f32 %v804_v53, 0.0  ;;  %v1829_v23 = vmax.f32 %v1061_v62, 0.0 }
 0x159   : > { %v1131_v59 = vpop.f32.mrf.mxu0  ;;  %v1388_v18 = vpop.f32.mrf.mxu1  ;;  %v1813_v49 = vmax.f32 %v1049_v1, 0.0  ;;  %v1950_v33 = vpack.c.bf16 %v1812_v50, %v1804_v2  ;;  %v1952_v30 = vpack.c.bf16 %v1814_v61, %v1806_v5  ;;  %v1803_v50 = vmax.f32 %v3679_v38, 0.0 }
 0x15a   : > { %v1828_v45 = vmax.f32 %v806_v17, 0.0  ;;  %v1830_v8 = vmax.f32 %v1063_v48, 0.0  ;;  %v1132_v34 = vadd.f32 %v1131_v59, %v4423_v0  ;;  %v1389_v13 = vadd.f32 %v1388_v18, %v4423_v0  ;;  %v4424_v48 = vld [vmem:[#allocation18_spill] sm:$0xff] }
 0x15b   : > { %v1133_v35 = vpop.f32.mrf.mxu0  ;;  %v1390_v47 = vpop.f32.mrf.mxu1  ;;  %v1957_v53 = vpack.c.bf16 %v1827_v21, %v1819_v15  ;;  %v1959_v62 = vpack.c.bf16 %v1829_v23, %v1821_v25  ;;  %v1805_v15 = vmax.f32 %v3685_v37, 0.0  ;;  %v1949_v5 = vpack.c.bf16 %v1811_v52, %v1803_v50 }
 0x15c   : > { %v1958_v6 = vpack.c.bf16 %v1828_v45, %v1820_v10  ;;  %v1960_v58 = vpack.c.bf16 %v1830_v8, %v1822_v27  ;;  %v1134_v63 = vadd.f32 %v1133_v35, %v4423_v0  ;;  %v1391_v16 = vadd.f32 %v1390_v47, %v4423_v0 }
 0x15d   : > { %v1137_v17 = vpop.f32.mrf.mxu0  ;;  %v1394_v41 = vpop.f32.mrf.mxu1  ;;  %v1583_v21 = vmax.f32 %v1132_v34, 0.0  ;;  %v1585_v45 = vmax.f32 %v1389_v13, 0.0  ;;  %v1951_v1 = vpack.c.bf16 %v1813_v49, %v1805_v15  ;;  %v1789_v35 = vmax.f32 %v3668_v7, 0.0 }
 0x15e   : > { %v1138_v59 = vadd.f32 %v1137_v17, %v4424_v48  ;;  %v1395_v18 = vadd.f32 %v1394_v41, %v4424_v48  ;;  %2003 = vmatprep.subr.bf16.mxu0 %v1958_v6  ;;  %2046 = vmatprep.subr.bf16.mxu1 %v1960_v58  ;;  %v1584_v61 = vmax.f32 %v1134_v63, 0.0  ;;  %v1586_v38 = vmax.f32 %v1391_v16, 0.0 }
 0x15f   : > { %v1139_v10 = vpop.f32.mrf.mxu0  ;;  %v1396_v25 = vpop.f32.mrf.mxu1  ;;  %2004 = vmatpush2.bf16.msra.mxu0 %v1957_v53  ;;  %2047 = vmatpush2.bf16.msra.mxu1 %v1959_v62  ;;  %v4427_v6 = vmax.f32 %v3646_v4, 0.0  ;;  %v4428_v53 = vld [vmem:[#allocation15_spill] sm:$0xff]  ;;  %v1779_v62 = vmax.f32 %v3659_v51, 0.0  ;;  %v1781_v16 = vmax.f32 %v3662_v56, 0.0  ;;  %v4431_v4 = vmax.f32 %v3636_v31, 0.0 }
 0x160   : > { %v1591_v0 = vmax.f32 %v1138_v59, 0.0  ;;  %v1593_v47 = vmax.f32 %v1395_v18, 0.0  ;;  %v1140_v32 = vadd.f32 %v1139_v10, %v4424_v48  ;;  %v1397_v2 = vadd.f32 %v1396_v25, %v4424_v48  ;;  %2005 = vmatprep.subr.bf16.mxu0 %v1950_v33  ;;  %2048 = vmatprep.subr.bf16.mxu1 %v1952_v30 }
 0x161   : > { %v1143_v23 = vpop.f32.mrf.mxu0  ;;  %v1400_v37 = vpop.f32.mrf.mxu1  ;;  %v1944_v58 = vpack.c.bf16 %v1798_v46, %v4427_v6  ;;  %v4432_v7 = vmax.f32 %v3649_v57, 0.0  ;;  %v4433_v30 = vmax.f32 %v3656_v44, 0.0  ;;  %v4434_v50 = vmax.f32 %v3620_v12, 0.0 }
 0x162   : > { %v3712_v27 = vpack.c.bf16 %v1591_v0, %v1583_v21  ;;  %v3714_v8 = vpack.c.bf16 %v1593_v47, %v1585_v45  ;;  %v1592_v34 = vmax.f32 %v1140_v32, 0.0  ;;  %v1594_v13 = vmax.f32 %v1397_v2, 0.0  ;;  %v4438_v45 = vld [vmem:[#allocation16_spill] sm:$0xff] }
 0x163   : > { %v1144_v33 = vadd.f32 %v1143_v23, %v4428_v53  ;;  %v1401_v52 = vadd.f32 %v1400_v37, %v4428_v53  ;;  %v1145_v49 = vpop.f32.mrf.mxu0  ;;  %v1402_v63 = vpop.f32.mrf.mxu1  ;;  %2006 = vmatpush2.bf16.msra.mxu0 %v1949_v5  ;;  %2049 = vmatpush2.bf16.msra.mxu1 %v1951_v1  ;;  %v1941_v46 = vpack.c.bf16 %v4432_v7, %v4431_v4  ;;  %v4435_v15 = vmax.f32 %v3628_v14, 0.0 }
 0x164   : > { %4425 = vst [vmem:[#allocation35_spill] sm:$0xff] %v3712_v27  ;;  %4426 = vst [vmem:[#allocation37_spill] sm:$0xff] %v3714_v8  ;;  %v3723_v17 = vpack.c.bf16 %v1592_v34, %v1584_v61  ;;  %v3725_v41 = vpack.c.bf16 %v1594_v13, %v1586_v38  ;;  %2007 = vmatprep.subr.bf16.mxu0 %v3682_v39  ;;  %v1943_v48 = vpack.c.bf16 %v4433_v30, %v1789_v35  ;;  %v4475_v8 = vld [vmem:[#allocation3_spill] sm:$0xff] }
 0x165   : > { %v1146_v59 = vadd.f32 %v1145_v49, %v4428_v53  ;;  %v1403_v51 = vadd.f32 %v1402_v63, %v4428_v53  ;;  %2050 = vmatprep.subr.bf16.mxu1 %v1944_v58  ;;  %v1149_v56 = vpop.f32.mrf.mxu0  ;;  %v1406_v18 = vpop.f32.mrf.mxu1  ;;  %v1934_v39 = vpack.c.bf16 %v4435_v15, %v4434_v50  ;;  %v4436_v31 = vmax.f32 %v3623_v22, 0.0 }
 0x166   : > { %4429 = vst [vmem:[#allocation38_spill] sm:$0xff] %v3723_v17  ;;  %4430 = vst [vmem:[#allocation25_spill] sm:$0xff] %v3725_v41  ;;  %v4437_v57 = vmax.f32 %v3633_v3, 0.0  ;;  %v1150_v44 = vadd.f32 %v1149_v56, %v4438_v45  ;;  %v1407_v10 = vadd.f32 %v1406_v18, %v4438_v45  ;;  %v1771_v25 = vmax.f32 %v3640_v24, 0.0  ;;  %v4449_v56 = vld [vmem:[#allocation40_spill] sm:$0xff] }
 0x167   : > { %v1773_v0 = vmax.f32 %v3643_v43, 0.0  ;;  %v1599_v47 = vmax.f32 %v1144_v33, 0.0  ;;  %v1601_v32 = vmax.f32 %v1401_v52, 0.0  ;;  %v1151_v2 = vpop.f32.mrf.mxu0  ;;  %v1408_v12 = vpop.f32.mrf.mxu1  ;;  %2008 = vmatpush2.bf16.msra.mxu0 %v1941_v46  ;;  %2051 = vmatpush2.bf16.msra.mxu1 %v1943_v48  ;;  %v1600_v38 = vmax.f32 %v1146_v59, 0.0  ;;  %v4447_v48 = vld [vmem:[#allocation41_spill] sm:$0xff] }
 0x168   : > { %v1936_v21 = vpack.c.bf16 %v4437_v57, %v4436_v31  ;;  %v1607_v14 = vmax.f32 %v1150_v44, 0.0  ;;  %v1609_v5 = vmax.f32 %v1407_v10, 0.0  ;;  %v1152_v22 = vadd.f32 %v1151_v2, %v4438_v45  ;;  %2009 = vmatprep.subr.bf16.mxu0 %v1934_v39  ;;  %v4452_v44 = vld [vmem:[#allocation56_spill] sm:$0xff]  ;;  %v4453_v10 = vld [vmem:[#allocation57_spill] sm:$0xff]  ;;  %v4454_v2 = vld [vmem:[#allocation54_spill] sm:$0xff] }
 0x169   : > { %v1409_v3 = vadd.f32 %v1408_v12, %v4438_v45  ;;  %v1933_v1 = vpack.c.bf16 %v1779_v62, %v1771_v25  ;;  %v1935_v61 = vpack.c.bf16 %v1781_v16, %v1773_v0  ;;  %v1602_v24 = vmax.f32 %v1403_v51, 0.0  ;;  %v3750_v23 = vpop.f32.mrf.mxu0  ;;  %v3752_v43 = vpop.f32.mrf.mxu1  ;;  %v4455_v12 = vld [vmem:[#allocation55_spill] sm:$0xff] }
 0x16a   : > { %2052 = vmatprep.subr.bf16.mxu1 %v1936_v21  ;;  %v3754_v37 = vpack.c.bf16 %v1607_v14, %v1599_v47  ;;  %v3756_v34 = vpack.c.bf16 %v1609_v5, %v1601_v32  ;;  %v1608_v13 = vmax.f32 %v1152_v22, 0.0  ;;  %v995_v6 = vadd.f32 %v3528_v11, %v4412_v28  ;;  %v4456_v14 = vld [vmem:[#allocation52_spill] sm:$0xff]  ;;  %v4457_v5 = vld [vmem:[#allocation53_spill] sm:$0xff] }
 0x16b   : > { %v1610_v35 = vmax.f32 %v1409_v3, 0.0  ;;  %v1755_v58 = vmax.f32 %v3613_v36, 0.0  ;;  %v1757_v53 = vmax.f32 %v3616_v29, 0.0  ;;  %v4441_v33 = vmax.f32 %v3584_v54, 0.0  ;;  %v3766_v63 = vpop.f32.mrf.mxu0  ;;  %v3768_v62 = vpop.f32.mrf.mxu1  ;;  %2010 = vmatpush2.bf16.msra.mxu0 %v1933_v1  ;;  %2053 = vmatpush2.bf16.msra.mxu1 %v1935_v61  ;;  %v3801_v1 = vld [vmem:[%s4241_s3] ss:$8 sps:$4 sm:$0xff]  }
 0x16c   : > { %4439 = vst [vmem:[#allocation26_spill] sm:$0xff] %v3754_v37  ;;  %4440 = vst [vmem:[#allocation23_spill] sm:$0xff] %v3756_v34  ;;  %v4442_v52 = vmax.f32 %v3609_v60, 0.0  ;;  %v1740_v16 = vmax.f32 %v3589_v55, 0.0  ;;  %v1742_v4 = vmax.f32 %v3593_v19, 0.0  ;;  %v3772_v11 = vpack.c.bf16 %v1608_v13, %v1600_v38  ;;  %2011 = vmatprep.subr.bf16.mxu0 %v3651_v20  ;;  %v4460_v13 = vld [vmem:[#allocation51_spill] sm:$0xff] }
 0x16d   : > { %v3774_v36 = vpack.c.bf16 %v1610_v35, %v1602_v24  ;;  %v1747_v54 = vmax.f32 %v3602_v26, 0.0  ;;  %v1749_v60 = vmax.f32 %v3605_v42, 0.0  ;;  %v4445_v29 = vmax.f32 %v3596_v9, 0.0  ;;  %v3783_v55 = vpop.f32.mrf.mxu0  ;;  %v3785_v19 = vpop.f32.mrf.mxu1  ;;  %v4451_v26 = vld [vmem:[#allocation42_spill] sm:$0xff]  ;;  %4458 = vst [vmem:[#allocation22_spill] sm:$0xff] %v3801_v1 }
 0x16e   : > { %v1928_v49 = vpack.c.bf16 %v4442_v52, %v4441_v33  ;;  %4443 = vst [vmem:[#allocation24_spill] sm:$0xff] %v3772_v11  ;;  %v4446_v46 = vmax.f32 %v3599_v40, 0.0  ;;  %v4448_v59 = vmax.f32 %v4447_v48, 0.0  ;;  %v4450_v20 = vmax.f32 %v4449_v56, 0.0  ;;  %v4459_v24 = vld [vmem:[#allocation50_spill] sm:$0xff]  ;;  %v4466_v56 = vld [vmem:[#allocation13_spill] sm:$0xff] }
 0x16f   : > { %4444 = vst [vmem:[#allocation21_spill] sm:$0xff] %v3774_v36  ;;  %v1925_v7 = vpack.c.bf16 %v4445_v29, %v1755_v58  ;;  %v1739_v50 = vmax.f32 %v4451_v26, 0.0  ;;  %v1741_v42 = vmax.f32 %v995_v6, 0.0  ;;  %v1163_v15 = vpop.f32.mrf.mxu0  ;;  %v1420_v9 = vpop.f32.mrf.mxu1  ;;  %v4461_v33 = vld [vmem:[#allocation46_spill] sm:$0xff]  ;;  %v4468_v26 = vld [vmem:[#allocation12_spill] sm:$0xff] }
 0x170   : > { %v1927_v30 = vpack.c.bf16 %v4446_v46, %v1757_v53  ;;  %2054 = vmatprep.subr.bf16.mxu1 %v1928_v49  ;;  %v1918_v51 = vpack.c.bf16 %v4448_v59, %v1740_v16  ;;  %v1920_v18 = vpack.c.bf16 %v4450_v20, %v1742_v4  ;;  %v4462_v29 = vld [vmem:[#allocation14_spill] sm:$0xff]  ;;  %v3818_v20 = vadd.f32 %v3750_v23, %v4466_v56 }
 0x171   : > { %2012 = vmatpush2.bf16.msra.mxu0 %v1925_v7  ;;  %v1917_v40 = vpack.c.bf16 %v1747_v54, %v1739_v50  ;;  %v1919_v39 = vpack.c.bf16 %v1749_v60, %v1741_v42  ;;  %v1167_v31 = vpop.f32.mrf.mxu0  ;;  %v1424_v57 = vpop.f32.mrf.mxu1  ;;  %v3810_v7 = vadd.f32 %v1163_v15, %v4462_v29  ;;  %v3813_v46 = vadd.f32 %v1420_v9, %v4462_v29 }
 0x172   : > { %2055 = vmatpush2.bf16.msra.mxu1 %v1927_v30  ;;  %2013 = vmatprep.subr.bf16.mxu0 %v1918_v51  ;;  %v4465_v30 = vld [vmem:[#allocation11_spill] sm:$0xff]  ;;  %4467 = vst [vmem:[#allocation17_spill] sm:$0xff] %v3818_v20  ;;  %v3826_v42 = vadd.f32 %v3766_v63, %v4466_v56  ;;  %v3830_v15 = vadd.f32 %v3768_v62, %v4466_v56 }
 0x173   : > { %2056 = vmatprep.subr.bf16.mxu1 %v1920_v18  ;;  %v1169_v21 = vpop.f32.mrf.mxu0  ;;  %v1426_v45 = vpop.f32.mrf.mxu1  ;;  %4463 = vst [vmem:[#allocation19_spill] sm:$0xff] %v3810_v7  ;;  %4464 = vst [vmem:[#allocation20_spill] sm:$0xff] %v3813_v46  ;;  %v3844_v63 = vadd.f32 %v3785_v19, %v4462_v29  ;;  %v4477_v46 = vld [vmem:[#allocation48_spill] sm:$0xff] }
 0x174   : > { %v1170_v48 = vadd.f32 %v1169_v21, %v4465_v30  ;;  %v3821_v18 = vadd.f32 %v1426_v45, %v4465_v30  ;;  %v3840_v21 = vadd.f32 %v3783_v55, %v4462_v29 }
 0x175   : > { %2014 = vmatpush2.bf16.msra.mxu0 %v1917_v40  ;;  %v1173_v25 = vpop.f32.mrf.mxu0  ;;  %v1430_v0 = vpop.f32.mrf.mxu1 }
 0x176   : > { %2057 = vmatpush2.bf16.msra.mxu1 %v1919_v39  ;;  %2015 = vmatprep.subr.bf16.mxu0 %v4452_v44  ;;  %v3833_v9 = vadd.f32 %v1173_v25, %v4468_v26  ;;  %v3836_v40 = vadd.f32 %v1430_v0, %v4468_v26  ;;  %v3855_v25 = vadd.f32 %v1424_v57, %v4465_v30  ;;  %v1632_v0 = vmax.f32 %v1170_v48, 0.0  ;;  %v4471_v57 = vld [vmem:[#allocation8_spill] sm:$0xff] }
 0x177   : > { %2058 = vmatprep.subr.bf16.mxu1 %v4453_v10  ;;  %v1175_v47 = vpop.f32.mrf.mxu0  ;;  %v1432_v32 = vpop.f32.mrf.mxu1  ;;  %v3852_v10 = vadd.f32 %v1167_v31, %v4465_v30 }
 0x178   : > { %v1176_v50 = vadd.f32 %v1175_v47, %v4468_v26  ;;  %v3848_v62 = vadd.f32 %v1432_v32, %v4468_v26 }
 0x179   : > { %2016 = vmatpush2.bf16.msra.mxu0 %v4454_v2  ;;  %v1179_v22 = vpop.f32.mrf.mxu0  ;;  %v1436_v3 = vpop.f32.mrf.mxu1 }
 0x17a   : > { %2059 = vmatpush2.bf16.msra.mxu1 %v4455_v12  ;;  %2017 = vmatprep.subr.bf16.mxu0 %v4456_v14  ;;  %v1640_v19 = vmax.f32 %v1176_v50, 0.0  ;;  %v4469_v12 = vld [vmem:[#allocation9_spill] sm:$0xff] }
 0x17b   : > { %2060 = vmatprep.subr.bf16.mxu1 %v4457_v5  ;;  %v1181_v61 = vpop.f32.mrf.mxu0  ;;  %v1438_v38 = vpop.f32.mrf.mxu1  ;;  %v3879_v44 = vadd.f32 %v1179_v22, %v4469_v12 }
 0x17c   : > { %v3859_v14 = vadd.f32 %v1181_v61, %v4469_v12  ;;  %v3862_v32 = vadd.f32 %v1438_v38, %v4469_v12  ;;  %v4472_v61 = vld [vmem:[#allocation7_spill] sm:$0xff]  ;;  %v3890_v5 = vpack.c.bf16 %v1640_v19, %v1632_v0 }
 0x17d   : > { %2018 = vmatpush2.bf16.msra.mxu0 %v4459_v24  ;;  %v1185_v35 = vpop.f32.mrf.mxu0  ;;  %v1442_v6 = vpop.f32.mrf.mxu1  ;;  %v4470_v24 = vld [vmem:[#allocation10_spill] sm:$0xff] }
 0x17e   : > { %2061 = vmatpush2.bf16.msra.mxu1 %v4460_v13 }
 0x17f   : > { %v1187_v58 = vpop.f32.mrf.mxu0  ;;  %v1444_v53 = vpop.f32.mrf.mxu1 }
 0x180   : > { %2020 = vmatmul.mubr.bf16.vlgmr.msra.gmra.mxu0 %v3801_v1  ;;  %v3867_v13 = vadd.f32 %v1187_v58, %v4470_v24  ;;  %v3872_v26 = vadd.f32 %v1444_v53, %v4470_v24  ;;  %v3882_v58 = vadd.f32 %v1436_v3, %v4469_v12  ;;  %v3898_v3 = vadd.f32 %v1185_v35, %v4470_v24 }
 0x181   : > { %2063 = vmatmul.mubr.bf16.vlgmr.msra.gmra.mxu1 %v3801_v1  ;;  %2105 = vmatprep.mubr.bf16.mxu0 %v4461_v33  ;;  %v1191_v52 = vpop.f32.mrf.mxu0  ;;  %v1448_v49 = vpop.f32.mrf.mxu1  ;;  %v4473_v1 = vld [vmem:[#allocation4_spill] sm:$0xff] }
 0x182   : > { %2148 = vmatprep.mubr.bf16.mxu1 %v4461_v33  ;;  %v3875_v50 = vadd.f32 %v1191_v52, %v4472_v61 }
 0x183   : > { %v1193_v16 = vpop.f32.mrf.mxu0  ;;  %v1450_v4 = vpop.f32.mrf.mxu1 }
 0x184   : > { %v1194_v38 = vadd.f32 %v1193_v16, %v4472_v61  ;;  %v3907_v16 = vadd.f32 %v1448_v49, %v4472_v61  ;;  %v4474_v49 = vld [vmem:[#allocation6_spill] sm:$0xff] }
 0x185   : > { %v1197_v54 = vpop.f32.mrf.mxu0  ;;  %v1454_v60 = vpop.f32.mrf.mxu1 }
 0x186   : > { %v3888_v45 = vadd.f32 %v1197_v54, %v4471_v57  ;;  %v3895_v22 = vadd.f32 %v1454_v60, %v4471_v57  ;;  %v1664_v60 = vmax.f32 %v1194_v38, 0.0 }
 0x187   : > { %v1199_v59 = vpop.f32.mrf.mxu0  ;;  %v1456_v51 = vpop.f32.mrf.mxu1 }
 0x188   : > { %v1200_v33 = vadd.f32 %v1199_v59, %v4471_v57  ;;  %v3885_v59 = vadd.f32 %v1450_v4, %v4472_v61  ;;  %v3901_v4 = vadd.f32 %v1442_v6, %v4470_v24  ;;  %v3915_v0 = vadd.f32 %v1456_v51, %v4471_v57 }
 0x189   : > { %v1203_v23 = vpop.f32.mrf.mxu0  ;;  %v1460_v39 = vpop.f32.mrf.mxu1 }
 0x18a   : > { %v1672_v12 = vmax.f32 %v1200_v33, 0.0  ;;  %v3918_v19 = vadd.f32 %v1203_v23, %v4473_v1  ;;  %v3924_v35 = vadd.f32 %v1460_v39, %v4473_v1  ;;  %v4476_v23 = vld [vmem:[#allocation5_spill] sm:$0xff] }
 0x18b   : > { %v1205_v55 = vpop.f32.mrf.mxu0  ;;  %v1462_v47 = vpop.f32.mrf.mxu1 }
 0x18c   : > { %v1206_v6 = vadd.f32 %v1205_v55, %v4473_v1  ;;  %v1463_v24 = vadd.f32 %v1462_v47, %v4473_v1  ;;  %v3921_v38 = vpack.c.bf16 %v1672_v12, %v1664_v60 }
 0x18d   : > { %v1209_v29 = vpop.f32.mrf.mxu0  ;;  %v1466_v30 = vpop.f32.mrf.mxu1 }
 0x18e   : > { %v3927_v55 = vadd.f32 %v1209_v29, %v4474_v49  ;;  %v1680_v12 = vmax.f32 %v1206_v6, 0.0  ;;  %v1682_v60 = vmax.f32 %v1463_v24, 0.0 }
 0x18f   : > { %v1211_v31 = vpop.f32.mrf.mxu0  ;;  %v1468_v53 = vpop.f32.mrf.mxu1 }
 0x190   : > { %v1212_v61 = vadd.f32 %v1211_v31, %v4474_v49  ;;  %v1469_v47 = vadd.f32 %v1468_v53, %v4474_v49  ;;  %v1467_v53 = vadd.f32 %v1466_v30, %v4474_v49 }
 0x191   : > { %v1215_v48 = vpop.f32.mrf.mxu0  ;;  %v1472_v2 = vpop.f32.mrf.mxu1 }
 0x192   : > { %v1216_v1 = vadd.f32 %v1215_v48, %v4475_v8  ;;  %v1473_v39 = vadd.f32 %v1472_v2, %v4475_v8  ;;  %v1688_v17 = vmax.f32 %v1212_v61, 0.0 }
 0x193   : > { %v1217_v54 = vpop.f32.mrf.mxu0  ;;  %v1474_v33 = vpop.f32.mrf.mxu1 }
 0x194   : > { %v1218_v51 = vadd.f32 %v1217_v54, %v4475_v8  ;;  %v1475_v57 = vadd.f32 %v1474_v33, %v4475_v8  ;;  %v1687_v33 = vmax.f32 %v3927_v55, 0.0  ;;  %v1695_v2 = vmax.f32 %v1216_v1, 0.0 }
 0x195   : > { %v1221_v52 = vpop.f32.mrf.mxu0  ;;  %v1478_v28 = vpop.f32.mrf.mxu1  ;;  %v1697_v20 = vmax.f32 %v1473_v39, 0.0  ;;  %v1674_v1 = vmax.f32 %v3915_v0, 0.0 }
 0x196   : > { %v1222_v27 = vadd.f32 %v1221_v52, %v4476_v23  ;;  %v1479_v31 = vadd.f32 %v1478_v28, %v4476_v23  ;;  %v1690_v52 = vmax.f32 %v1469_v47, 0.0  ;;  %v1696_v36 = vmax.f32 %v1218_v51, 0.0 }
 0x197   : > { %v1223_v29 = vpop.f32.mrf.mxu0  ;;  %v1480_v41 = vpop.f32.mrf.mxu1  ;;  %v1698_v48 = vmax.f32 %v1475_v57, 0.0 }
 0x198   : > { %v1224_v34 = vadd.f32 %v1223_v29, %v4476_v23  ;;  %v1481_v54 = vadd.f32 %v1480_v41, %v4476_v23  ;;  %v1703_v37 = vmax.f32 %v1222_v27, 0.0  ;;  %v1705_v28 = vmax.f32 %v1479_v31, 0.0 }
 0x199   : > { %v1227_v6 = vpop.f32.mrf.mxu0  ;;  %v1484_v24 = vpop.f32.mrf.mxu1  ;;  %v1689_v41 = vmax.f32 %v1467_v53, 0.0  ;;  %v1890_v23 = vpack.c.bf16 %v1688_v17, %v1680_v12  ;;  %v1892_v39 = vpack.c.bf16 %v1690_v52, %v1682_v60  ;;  %v1679_v17 = vmax.f32 %v3918_v19, 0.0 }
 0x19a   : > { %v1704_v11 = vmax.f32 %v1224_v34, 0.0  ;;  %v1706_v8 = vmax.f32 %v1481_v54, 0.0  ;;  %v1228_v30 = vadd.f32 %v1227_v6, %v4477_v46  ;;  %v1485_v49 = vadd.f32 %v1484_v24, %v4477_v46  ;;  %v4478_v54 = vld [vmem:[#allocation49_spill] sm:$0xff] }
 0x19b   : > { %v1229_v61 = vpop.f32.mrf.mxu0  ;;  %v1486_v29 = vpop.f32.mrf.mxu1  ;;  %v1897_v27 = vpack.c.bf16 %v1703_v37, %v1695_v2  ;;  %v1899_v31 = vpack.c.bf16 %v1705_v28, %v1697_v20  ;;  %v1681_v37 = vmax.f32 %v3924_v35, 0.0  ;;  %v1889_v52 = vpack.c.bf16 %v1687_v33, %v1679_v17 }
 0x19c   : > { %v1898_v55 = vpack.c.bf16 %v1704_v11, %v1696_v36  ;;  %v1900_v47 = vpack.c.bf16 %v1706_v8, %v1698_v48  ;;  %v1230_v7 = vadd.f32 %v1229_v61, %v4477_v46  ;;  %v1487_v51 = vadd.f32 %v1486_v29, %v4477_v46 }
 0x19d   : > { %v1233_v34 = vpop.f32.mrf.mxu0  ;;  %v1490_v57 = vpop.f32.mrf.mxu1  ;;  %v1711_v11 = vmax.f32 %v1228_v30, 0.0  ;;  %v1713_v36 = vmax.f32 %v1485_v49, 0.0  ;;  %v1891_v28 = vpack.c.bf16 %v1689_v41, %v1681_v37  ;;  %v1665_v29 = vmax.f32 %v3907_v16, 0.0 }
 0x19e   : > { %v1234_v6 = vadd.f32 %v1233_v34, %v4478_v54  ;;  %v1491_v24 = vadd.f32 %v1490_v57, %v4478_v54  ;;  %2073 = vmatprep.subr.bf16.mxu0 %v1898_v55  ;;  %2116 = vmatprep.subr.bf16.mxu1 %v1900_v47  ;;  %v1712_v48 = vmax.f32 %v1230_v7, 0.0  ;;  %v1714_v19 = vmax.f32 %v1487_v51, 0.0 }
 0x19f   : > { %v1235_v20 = vpop.f32.mrf.mxu0  ;;  %v1492_v12 = vpop.f32.mrf.mxu1  ;;  %2074 = vmatpush1.bf16.msra.mxu0 %v1897_v27  ;;  %2117 = vmatpush1.bf16.msra.mxu1 %v1899_v31  ;;  %v4481_v55 = vmax.f32 %v3885_v59, 0.0  ;;  %v4482_v27 = vld [vmem:[#allocation45_spill] sm:$0xff]  ;;  %v1655_v31 = vmax.f32 %v3898_v3, 0.0  ;;  %v1657_v51 = vmax.f32 %v3901_v4, 0.0  ;;  %v4485_v59 = vmax.f32 %v3875_v50, 0.0 }
 0x1a0   : > { %v1719_v46 = vmax.f32 %v1234_v6, 0.0  ;;  %v1721_v53 = vmax.f32 %v1491_v24, 0.0  ;;  %v1236_v0 = vadd.f32 %v1235_v20, %v4478_v54  ;;  %v1493_v60 = vadd.f32 %v1492_v12, %v4478_v54  ;;  %2075 = vmatprep.subr.bf16.mxu0 %v1890_v23  ;;  %2118 = vmatprep.subr.bf16.mxu1 %v1892_v39 }
 0x1a1   : > { %v1239_v8 = vpop.f32.mrf.mxu0  ;;  %v1496_v35 = vpop.f32.mrf.mxu1  ;;  %v1884_v47 = vpack.c.bf16 %v1674_v1, %v4481_v55  ;;  %v4486_v16 = vmax.f32 %v3888_v45, 0.0  ;;  %v4487_v39 = vmax.f32 %v3895_v22, 0.0  ;;  %v4488_v17 = vmax.f32 %v3859_v14, 0.0 }
 0x1a2   : > { %v3951_v2 = vpack.c.bf16 %v1719_v46, %v1711_v11  ;;  %v3953_v30 = vpack.c.bf16 %v1721_v53, %v1713_v36  ;;  %v1720_v49 = vmax.f32 %v1236_v0, 0.0  ;;  %v1722_v61 = vmax.f32 %v1493_v60, 0.0  ;;  %v4492_v36 = vld [vmem:[#allocation47_spill] sm:$0xff] }
 0x1a3   : > { %v1240_v23 = vadd.f32 %v1239_v8, %v4482_v27  ;;  %v1497_v33 = vadd.f32 %v1496_v35, %v4482_v27  ;;  %v1241_v41 = vpop.f32.mrf.mxu0  ;;  %v1498_v7 = vpop.f32.mrf.mxu1  ;;  %2076 = vmatpush1.bf16.msra.mxu0 %v1889_v52  ;;  %2119 = vmatpush1.bf16.msra.mxu1 %v1891_v28  ;;  %v1881_v1 = vpack.c.bf16 %v4486_v16, %v4485_v59  ;;  %v4489_v37 = vmax.f32 %v3867_v13, 0.0 }
 0x1a4   : > { %4479 = vst [vmem:[#allocation18_spill] sm:$0xff] %v3951_v2  ;;  %4480 = vst [vmem:[#allocation15_spill] sm:$0xff] %v3953_v30  ;;  %v3962_v34 = vpack.c.bf16 %v1720_v49, %v1712_v48  ;;  %v3964_v57 = vpack.c.bf16 %v1722_v61, %v1714_v19  ;;  %2077 = vmatprep.subr.bf16.mxu0 %v3921_v38  ;;  %v1883_v54 = vpack.c.bf16 %v4487_v39, %v1665_v29  ;;  %v4505_v39 = vld [vmem:[#allocation19_spill] sm:$0xff]  ;;  %v4531_v2 = vld [vmem:[#allocation32_spill] sm:$0xff] }
 0x1a5   : > { %v1242_v6 = vadd.f32 %v1241_v41, %v4482_v27  ;;  %v1499_v3 = vadd.f32 %v1498_v7, %v4482_v27  ;;  %2120 = vmatprep.subr.bf16.mxu1 %v1884_v47  ;;  %v1245_v4 = vpop.f32.mrf.mxu0  ;;  %v1502_v24 = vpop.f32.mrf.mxu1  ;;  %v1874_v38 = vpack.c.bf16 %v4489_v37, %v4488_v17  ;;  %v4490_v50 = vmax.f32 %v3862_v32, 0.0  ;;  %v4530_v30 = vld [vmem:[#allocation31_spill] sm:$0xff] }
 0x1a6   : > { %4483 = vst [vmem:[#allocation16_spill] sm:$0xff] %v3962_v34  ;;  %4484 = vst [vmem:[#allocation41_spill] sm:$0xff] %v3964_v57  ;;  %v4491_v45 = vmax.f32 %v3872_v26, 0.0  ;;  %v1246_v22 = vadd.f32 %v1245_v4, %v4492_v36  ;;  %v1503_v20 = vadd.f32 %v1502_v24, %v4492_v36  ;;  %v1647_v12 = vmax.f32 %v3879_v44, 0.0  ;;  %v4532_v57 = vld [vmem:[#allocation30_spill] sm:$0xff] }
 0x1a7   : > { %v1649_v46 = vmax.f32 %v3882_v58, 0.0  ;;  %v1727_v53 = vmax.f32 %v1240_v23, 0.0  ;;  %v1729_v0 = vmax.f32 %v1497_v33, 0.0  ;;  %v1247_v60 = vpop.f32.mrf.mxu0  ;;  %v1504_v14 = vpop.f32.mrf.mxu1  ;;  %2078 = vmatpush1.bf16.msra.mxu0 %v1881_v1  ;;  %2121 = vmatpush1.bf16.msra.mxu1 %v1883_v54  ;;  %v1728_v19 = vmax.f32 %v1242_v6, 0.0 }
 0x1a8   : > { %v1876_v11 = vpack.c.bf16 %v4491_v45, %v4490_v50  ;;  %v1735_v13 = vmax.f32 %v1246_v22, 0.0  ;;  %v1737_v52 = vmax.f32 %v1503_v20, 0.0  ;;  %v1248_v32 = vadd.f32 %v1247_v60, %v4492_v36  ;;  %2079 = vmatprep.subr.bf16.mxu0 %v1874_v38  ;;  %v4511_v22 = vld [vmem:[#allocation21_spill] sm:$0xff]  ;;  %v4513_v60 = vld [vmem:[#allocation23_spill] sm:$0xff] }
 0x1a9   : > { %v1505_v26 = vadd.f32 %v1504_v14, %v4492_v36  ;;  %v1873_v28 = vpack.c.bf16 %v1655_v31, %v1647_v12  ;;  %v1875_v48 = vpack.c.bf16 %v1657_v51, %v1649_v46  ;;  %v1730_v44 = vmax.f32 %v1499_v3, 0.0  ;;  %v3989_v8 = vpop.f32.mrf.mxu0  ;;  %v3991_v58 = vpop.f32.mrf.mxu1  ;;  %v4507_v3 = vld [vmem:[#allocation20_spill] sm:$0xff]  ;;  %v4514_v14 = vld [vmem:[#allocation38_spill] sm:$0xff] }
 0x1aa   : > { %2122 = vmatprep.subr.bf16.mxu1 %v1876_v11  ;;  %4493 = vst [vmem:[#allocation40_spill] sm:$0xff] %v3989_v8  ;;  %4494 = vst [vmem:[#allocation42_spill] sm:$0xff] %v3991_v58  ;;  %v3993_v35 = vpack.c.bf16 %v1735_v13, %v1727_v53  ;;  %v3995_v49 = vpack.c.bf16 %v1737_v52, %v1729_v0  ;;  %v1736_v61 = vmax.f32 %v1248_v32, 0.0  ;;  %v1631_v47 = vmax.f32 %v3852_v10, 0.0  ;;  %v4510_v36 = vld [vmem:[#allocation24_spill] sm:$0xff]  ;;  %v4512_v0 = vld [vmem:[#allocation26_spill] sm:$0xff] }
 0x1ab   : > { %v1738_v29 = vmax.f32 %v1505_v26, 0.0  ;;  %v1413_v55 = vadd.f32 %v3752_v43, %v4466_v56  ;;  %v1633_v27 = vmax.f32 %v3855_v25, 0.0  ;;  %v4497_v23 = vmax.f32 %v3821_v18, 0.0  ;;  %v4005_v7 = vpop.f32.mrf.mxu0  ;;  %v4007_v31 = vpop.f32.mrf.mxu1  ;;  %2080 = vmatpush1.bf16.msra.mxu0 %v1873_v28  ;;  %2123 = vmatpush1.bf16.msra.mxu1 %v1875_v48  ;;  %v4515_v13 = vld [vmem:[#allocation25_spill] sm:$0xff]  ;;  %v4516_v48 = vld [vmem:[#allocation35_spill] sm:$0xff] }
 0x1ac   : > { %4495 = vst [vmem:[#allocation56_spill] sm:$0xff] %v3993_v35  ;;  %4496 = vst [vmem:[#allocation57_spill] sm:$0xff] %v3995_v49  ;;  %v4498_v33 = vmax.f32 %v3848_v62, 0.0  ;;  %v1616_v51 = vmax.f32 %v3826_v42, 0.0  ;;  %v1618_v59 = vmax.f32 %v3830_v15, 0.0  ;;  %v4011_v43 = vpack.c.bf16 %v1736_v61, %v1728_v19  ;;  %2081 = vmatprep.subr.bf16.mxu0 %v3890_v5  ;;  %v4517_v19 = vld [vmem:[#allocation37_spill] sm:$0xff] }
 0x1ad   : > { %v4013_v56 = vpack.c.bf16 %v1738_v29, %v1730_v44  ;;  %v1623_v18 = vmax.f32 %v3840_v21, 0.0  ;;  %v1625_v62 = vmax.f32 %v3844_v63, 0.0  ;;  %v4501_v10 = vmax.f32 %v3833_v9, 0.0  ;;  %v4022_v42 = vpop.f32.mrf.mxu0  ;;  %v4024_v15 = vpop.f32.mrf.mxu1  ;;  %v4509_v21 = vld [vmem:[#allocation17_spill] sm:$0xff] }
 0x1ae   : > { %v1868_v41 = vpack.c.bf16 %v4498_v33, %v4497_v23  ;;  %4499 = vst [vmem:[#allocation54_spill] sm:$0xff] %v4011_v43  ;;  %v4502_v16 = vmax.f32 %v3836_v40, 0.0  ;;  %4503 = vst [vmem:[#allocation52_spill] sm:$0xff] %v4022_v42  ;;  %v4506_v54 = vmax.f32 %v4505_v39, 0.0  ;;  %v4508_v5 = vmax.f32 %v4507_v3, 0.0  ;;  %v4518_v3 = vld [vmem:[#allocation43_spill] sm:$0xff] }
 0x1af   : > { %4500 = vst [vmem:[#allocation55_spill] sm:$0xff] %v4013_v56  ;;  %v1865_v25 = vpack.c.bf16 %v4501_v10, %v1631_v47  ;;  %4504 = vst [vmem:[#allocation53_spill] sm:$0xff] %v4024_v15  ;;  %v1615_v24 = vmax.f32 %v4509_v21, 0.0  ;;  %v1617_v63 = vmax.f32 %v1413_v55, 0.0  ;;  %v1259_v17 = vpop.f32.mrf.mxu0  ;;  %v1516_v9 = vpop.f32.mrf.mxu1  ;;  %v4521_v21 = vld [vmem:[#allocation44_spill] sm:$0xff] }
 0x1b0   : > { %v1867_v1 = vpack.c.bf16 %v4502_v16, %v1633_v27  ;;  %2124 = vmatprep.subr.bf16.mxu1 %v1868_v41  ;;  %v1858_v6 = vpack.c.bf16 %v4506_v54, %v1616_v51  ;;  %v1860_v4 = vpack.c.bf16 %v4508_v5, %v1618_v59  ;;  %v4061_v5 = vadd.f32 %v4005_v7, %v4518_v3  ;;  %v4527_v7 = vld [vmem:[#allocation39_spill] sm:$0xff]  ;;  %v4534_v43 = vld [vmem:[#allocation28_spill] sm:$0xff] }
 0x1b1   : > { %2082 = vmatpush1.bf16.msra.mxu0 %v1865_v25  ;;  %v1857_v40 = vpack.c.bf16 %v1623_v18, %v1615_v24  ;;  %v1859_v37 = vpack.c.bf16 %v1625_v62, %v1617_v63  ;;  %v4031_v38 = vpop.f32.mrf.mxu0  ;;  %v4033_v50 = vpop.f32.mrf.mxu1  ;;  %v4068_v24 = vadd.f32 %v1259_v17, %v4521_v21  ;;  %v4071_v63 = vadd.f32 %v1516_v9, %v4521_v21 }
 0x1b2   : > { %2125 = vmatpush1.bf16.msra.mxu1 %v1867_v1  ;;  %2083 = vmatprep.subr.bf16.mxu0 %v1858_v6  ;;  %4519 = vst [vmem:[#allocation50_spill] sm:$0xff] %v4061_v5  ;;  %v4535_v5 = vld [vmem:[#allocation29_spill] sm:$0xff] }
 0x1b3   : > { %2126 = vmatprep.subr.bf16.mxu1 %v1860_v4  ;;  %v1265_v45 = vpop.f32.mrf.mxu0  ;;  %v1522_v11 = vpop.f32.mrf.mxu1  ;;  %v4065_v4 = vadd.f32 %v4007_v31, %v4518_v3  ;;  %4522 = vst [vmem:[#allocation46_spill] sm:$0xff] %v4068_v24  ;;  %4523 = vst [vmem:[#allocation14_spill] sm:$0xff] %v4071_v63 }
 0x1b5   : > { %2084 = vmatpush1.bf16.msra.mxu0 %v1857_v40  ;;  %v4037_v20 = vpop.f32.mrf.mxu0  ;;  %v4039_v12 = vpop.f32.mrf.mxu1  ;;  %4520 = vst [vmem:[#allocation51_spill] sm:$0xff] %v4065_v4 }
 0x1b6   : > { %2127 = vmatpush1.bf16.msra.mxu1 %v1859_v37  ;;  %2085 = vmatprep.subr.bf16.mxu0 %v4510_v36  ;;  %v4524_v36 = vld [vmem:[#allocation36_spill] sm:$0xff] }
 0x1b7   : > { %2128 = vmatprep.subr.bf16.mxu1 %v4511_v22  ;;  %v1271_v46 = vpop.f32.mrf.mxu0  ;;  %v1528_v53 = vpop.f32.mrf.mxu1  ;;  %v4074_v22 = vadd.f32 %v1265_v45, %v4524_v36 }
 0x1b8   : > { %v4083_v31 = vadd.f32 %v1528_v53, %v4527_v7 }
 0x1b9   : > { %2086 = vmatpush1.bf16.msra.mxu0 %v4512_v0  ;;  %v4045_v52 = vpop.f32.mrf.mxu0  ;;  %v4047_v32 = vpop.f32.mrf.mxu1  ;;  %4525 = vst [vmem:[#allocation11_spill] sm:$0xff] %v4074_v22  ;;  %v4077_v0 = vadd.f32 %v1522_v11, %v4524_v36 }
 0x1ba   : > { %2129 = vmatpush1.bf16.msra.mxu1 %v4513_v60  ;;  %2087 = vmatprep.subr.bf16.mxu0 %v4514_v14  ;;  %v4080_v60 = vadd.f32 %v1271_v46, %v4527_v7  ;;  %v4528_v14 = vld [vmem:[#allocation33_spill] sm:$0xff] }
 0x1bb   : > { %2130 = vmatprep.subr.bf16.mxu1 %v4515_v13  ;;  %v1277_v26 = vpop.f32.mrf.mxu0  ;;  %v1534_v28 = vpop.f32.mrf.mxu1  ;;  %4526 = vst [vmem:[#allocation13_spill] sm:$0xff] %v4077_v0  ;;  %v4529_v13 = vld [vmem:[#allocation34_spill] sm:$0xff] }
 0x1bc   : > { %v4086_v17 = vadd.f32 %v1277_v26, %v4528_v14  ;;  %v4089_v9 = vadd.f32 %v1534_v28, %v4528_v14 }
 0x1bd   : > { %2088 = vmatpush1.bf16.msra.mxu0 %v4516_v48  ;;  %v4051_v44 = vpop.f32.mrf.mxu0  ;;  %v4053_v61 = vpop.f32.mrf.mxu1 }
 0x1be   : > { %2131 = vmatpush1.bf16.msra.mxu1 %v4517_v19 }
 0x1bf   : > { %v1283_v29 = vpop.f32.mrf.mxu0  ;;  %v1540_v55 = vpop.f32.mrf.mxu1 }
 0x1c0   : > { %v4092_v48 = vadd.f32 %v1283_v29, %v4529_v13  ;;  %v4095_v45 = vadd.f32 %v1540_v55, %v4529_v13 }
 0x1c1   : > { %v4055_v47 = vpop.f32.mrf.mxu0  ;;  %v4057_v27 = vpop.f32.mrf.mxu1 }
 0x1c3   : > { %v1289_v23 = vpop.f32.mrf.mxu0  ;;  %v1546_v33 = vpop.f32.mrf.mxu1 }
 0x1c4   : > { %v4098_v46 = vadd.f32 %v1289_v23, %v4530_v30  ;;  %v4101_v53 = vadd.f32 %v1546_v33, %v4530_v30  ;;  %v4533_v33 = vld [vmem:[#allocation27_spill] sm:$0xff] }
 0x1c5   : > { %v1293_v41 = vpop.f32.mrf.mxu0  ;;  %v1550_v51 = vpop.f32.mrf.mxu1 }
 0x1c6   : > { %v4104_v26 = vadd.f32 %v1293_v41, %v4531_v2  ;;  %v4107_v28 = vadd.f32 %v1550_v51, %v4531_v2 }
 0x1c7   : > { %v1295_v59 = vpop.f32.mrf.mxu0  ;;  %v1552_v18 = vpop.f32.mrf.mxu1 }
 0x1c8   : > { %v4110_v29 = vadd.f32 %v1295_v59, %v4531_v2  ;;  %v4113_v55 = vadd.f32 %v1552_v18, %v4531_v2 }
 0x1c9   : > { %v1299_v62 = vpop.f32.mrf.mxu0  ;;  %v1556_v10 = vpop.f32.mrf.mxu1 }
 0x1cb   : > { %v1301_v25 = vpop.f32.mrf.mxu0  ;;  %v1558_v16 = vpop.f32.mrf.mxu1 }
 0x1cc   : > { %v1302_v59 = vadd.f32 %v1301_v25, %v4535_v5  ;;  %v1559_v58 = vadd.f32 %v1558_v16, %v4535_v5 }
 0x1cd   : > { %v1305_v1 = vpop.f32.mrf.mxu0  ;;  %v1562_v39 = vpop.f32.mrf.mxu1 }
 0x1ce   : > { %v1306_v8 = vadd.f32 %v1305_v1, %v4532_v57  ;;  %v1808_v15 = vmax.f32 %v1302_v59, 0.0  ;;  %v1770_v59 = vmax.f32 %v4083_v31, 0.0 }
 0x1cf   : > { %v1307_v54 = vpop.f32.mrf.mxu0  ;;  %v1564_v6 = vpop.f32.mrf.mxu1 }
 0x1d0   : > { %v1308_v34 = vadd.f32 %v1307_v54, %v4532_v57  ;;  %v1565_v23 = vadd.f32 %v1564_v6, %v4532_v57  ;;  %v1815_v42 = vmax.f32 %v1306_v8, 0.0  ;;  %v1282_v8 = vadd.f32 %v4051_v44, %v4529_v13 }
 0x1d1   : > { %v1311_v40 = vpop.f32.mrf.mxu0  ;;  %v1568_v37 = vpop.f32.mrf.mxu1 }
 0x1d2   : > { %v1312_v2 = vadd.f32 %v1311_v40, %v4533_v33  ;;  %v1569_v18 = vadd.f32 %v1568_v37, %v4533_v33  ;;  %v1816_v3 = vmax.f32 %v1308_v34, 0.0  ;;  %v1300_v37 = vadd.f32 %v1299_v62, %v4535_v5 }
 0x1d3   : > { %v1313_v11 = vpop.f32.mrf.mxu0  ;;  %v1570_v19 = vpop.f32.mrf.mxu1  ;;  %v1288_v62 = vadd.f32 %v4055_v47, %v4530_v30  ;;  %v1799_v47 = vmax.f32 %v4104_v26, 0.0  ;;  %v1778_v26 = vmax.f32 %v4089_v9, 0.0  ;;  %v4536_v9 = vld [vmem:[#allocation52_spill] sm:$0xff] }
 0x1d4   : > { %v1314_v56 = vadd.f32 %v1313_v11, %v4533_v33  ;;  %v1571_v41 = vadd.f32 %v1570_v19, %v4533_v33  ;;  %v1563_v11 = vadd.f32 %v1562_v39, %v4532_v57  ;;  %v1557_v33 = vadd.f32 %v1556_v10, %v4535_v5 }
 0x1d5   : > { %v1317_v49 = vpop.f32.mrf.mxu0  ;;  %v1574_v35 = vpop.f32.mrf.mxu1  ;;  %v1823_v22 = vmax.f32 %v1312_v2, 0.0  ;;  %v1825_v1 = vmax.f32 %v1569_v18, 0.0  ;;  %v1810_v57 = vmax.f32 %v1559_v58, 0.0  ;;  %v1545_v58 = vadd.f32 %v4057_v27, %v4530_v30 }
 0x1d6   : > { %v1318_v4 = vadd.f32 %v1317_v49, %v4534_v43  ;;  %v1575_v51 = vadd.f32 %v1574_v35, %v4534_v43  ;;  %v1818_v35 = vmax.f32 %v1565_v23, 0.0  ;;  %v1824_v24 = vmax.f32 %v1314_v56, 0.0 }
 0x1d7   : > { %v1319_v54 = vpop.f32.mrf.mxu0  ;;  %v1576_v6 = vpop.f32.mrf.mxu1  ;;  %v1826_v16 = vmax.f32 %v1571_v41, 0.0  ;;  %v1802_v56 = vmax.f32 %v4113_v55, 0.0  ;;  %v1954_v41 = vpack.c.bf16 %v1816_v3, %v1808_v15  ;;  %v1807_v10 = vmax.f32 %v1300_v37, 0.0  ;;  %v4541_v37 = vld [vmem:[#allocation14_spill] sm:$0xff] }
 0x1d8   : > { %v1320_v19 = vadd.f32 %v1319_v54, %v4534_v43  ;;  %v1577_v49 = vadd.f32 %v1576_v6, %v4534_v43  ;;  %v1831_v63 = vmax.f32 %v1318_v4, 0.0  ;;  %v1833_v25 = vmax.f32 %v1575_v51, 0.0 }
 0x1d9   : > { %v1817_v43 = vmax.f32 %v1563_v11, 0.0  ;;  %v1800_v4 = vmax.f32 %v4110_v29, 0.0  ;;  %v1956_v51 = vpack.c.bf16 %v1818_v35, %v1810_v57  ;;  %v1809_v5 = vmax.f32 %v1557_v33, 0.0  ;;  %v4537_v11 = vld [vmem:[#allocation53_spill] sm:$0xff] }
 0x1da   : > { %v1832_v0 = vmax.f32 %v1320_v19, 0.0  ;;  %v1834_v40 = vmax.f32 %v1577_v49, 0.0  ;;  %v1961_v34 = vpack.c.bf16 %v1831_v63, %v1823_v22  ;;  %v1963_v23 = vpack.c.bf16 %v1833_v25, %v1825_v1  ;;  %v4538_v19 = vld [vmem:[#allocation11_spill] sm:$0xff]  ;;  %v4539_v49 = vld [vmem:[#allocation13_spill] sm:$0xff] }
 0x1db   : > { %v1792_v15 = vmax.f32 %v4098_v46, 0.0  ;;  %v1794_v3 = vmax.f32 %v4101_v53, 0.0  ;;  %v1801_v30 = vmax.f32 %v4107_v28, 0.0  ;;  %v1953_v27 = vpack.c.bf16 %v1815_v42, %v1807_v10 }
 0x1dc   : > { %v1962_v39 = vpack.c.bf16 %v1832_v0, %v1824_v24  ;;  %v1964_v54 = vpack.c.bf16 %v1834_v40, %v1826_v16  ;;  %v1539_v24 = vadd.f32 %v4053_v61, %v4529_v13  ;;  %v1955_v63 = vpack.c.bf16 %v1817_v43, %v1809_v5 }
 0x1dd   : > { %v1784_v22 = vmax.f32 %v4092_v48, 0.0  ;;  %v1786_v0 = vmax.f32 %v4095_v45, 0.0  ;;  %v1946_v44 = vpack.c.bf16 %v1800_v4, %v1792_v15  ;;  %v1948_v29 = vpack.c.bf16 %v1802_v56, %v1794_v3  ;;  %v4545_v56 = vld [vmem:[#allocation50_spill] sm:$0xff] }
 0x1de   : > { %2089 = vmatprep.subr.bf16.mxu0 %v1962_v39  ;;  %2132 = vmatprep.subr.bf16.mxu1 %v1964_v54  ;;  %v1276_v61 = vadd.f32 %v4045_v52, %v4528_v14  ;;  %v1533_v13 = vadd.f32 %v4047_v32, %v4528_v14  ;;  %v1791_v46 = vmax.f32 %v1288_v62, 0.0  ;;  %v1793_v53 = vmax.f32 %v1545_v58, 0.0  ;;  %v4542_v39 = vld [vmem:[#allocation43_spill] sm:$0xff]  ;;  %v4543_v54 = vld [vmem:[#allocation40_spill] sm:$0xff] }
 0x1df   : > { %2090 = vmatpush2.bf16.msra.mxu0 %v1961_v34  ;;  %2133 = vmatpush2.bf16.msra.mxu1 %v1963_v23  ;;  %v1270_v42 = vadd.f32 %v4037_v20, %v4527_v7  ;;  %v1527_v48 = vadd.f32 %v4039_v12, %v4527_v7  ;;  %v1776_v45 = vmax.f32 %v4086_v17, 0.0  ;;  %v1783_v52 = vmax.f32 %v1282_v8, 0.0 }
 0x1e0   : > { %2091 = vmatprep.subr.bf16.mxu0 %v1954_v41  ;;  %2134 = vmatprep.subr.bf16.mxu1 %v1956_v51  ;;  %v1785_v28 = vmax.f32 %v1539_v24, 0.0  ;;  %v1945_v55 = vpack.c.bf16 %v1799_v47, %v1791_v46  ;;  %v1947_v32 = vpack.c.bf16 %v1801_v30, %v1793_v53  ;;  %v1768_v14 = vmax.f32 %v4080_v60, 0.0  ;;  %v4546_v51 = vld [vmem:[#allocation51_spill] sm:$0xff]  ;;  %v4555_v53 = vld [vmem:[#allocation22_spill] sm:$0xff] }
 0x1e1   : > { %v1938_v2 = vpack.c.bf16 %v1784_v22, %v1776_v45  ;;  %v1940_v18 = vpack.c.bf16 %v1786_v0, %v1778_v26  ;;  %v1264_v20 = vadd.f32 %v4031_v38, %v4524_v36  ;;  %v1521_v12 = vadd.f32 %v4033_v50, %v4524_v36  ;;  %v4540_v36 = vld [vmem:[#allocation46_spill] sm:$0xff]  ;;  %v4548_v22 = vld [vmem:[#allocation55_spill] sm:$0xff]  ;;  %v4549_v0 = vld [vmem:[#allocation56_spill] sm:$0xff] }
 0x1e2   : > { %v1775_v7 = vmax.f32 %v1276_v61, 0.0  ;;  %v1777_v17 = vmax.f32 %v1533_v13, 0.0  ;;  %v1258_v6 = vadd.f32 %v4536_v9, %v4521_v21  ;;  %v1515_v60 = vadd.f32 %v4537_v11, %v4521_v21  ;;  %v4544_v21 = vld [vmem:[#allocation42_spill] sm:$0xff]  ;;  %v4552_v61 = vld [vmem:[#allocation41_spill] sm:$0xff]  ;;  %v4554_v46 = vld [vmem:[#allocation15_spill] sm:$0xff] }
 0x1e3   : > { %2092 = vmatpush2.bf16.msra.mxu0 %v1953_v27  ;;  %2135 = vmatpush2.bf16.msra.mxu1 %v1955_v63  ;;  %v1760_v31 = vmax.f32 %v4538_v19, 0.0  ;;  %v1762_v35 = vmax.f32 %v4539_v49, 0.0  ;;  %v1767_v38 = vmax.f32 %v1270_v42, 0.0  ;;  %v1769_v25 = vmax.f32 %v1527_v48, 0.0  ;;  %v4547_v63 = vld [vmem:[#allocation54_spill] sm:$0xff]  ;;  %v1970_v42 = vpop.permute.xlu0 %1969 }
 0x1e4   : > { %2093 = vmatprep.subr.bf16.mxu0 %v1946_v44  ;;  %2136 = vmatprep.subr.bf16.mxu1 %v1948_v29  ;;  %v1937_v16 = vpack.c.bf16 %v1783_v52, %v1775_v7  ;;  %v1939_v50 = vpack.c.bf16 %v1785_v28, %v1777_v17  ;;  %v1752_v40 = vmax.f32 %v4540_v36, 0.0  ;;  %v1754_v33 = vmax.f32 %v4541_v37, 0.0  ;;  %v4550_v44 = vld [vmem:[#allocation57_spill] sm:$0xff]  ;;  %v4551_v29 = vld [vmem:[#allocation16_spill] sm:$0xff]  ;;  %v4553_v13 = vld [vmem:[#allocation18_spill] sm:$0xff] }
 0x1e5   : > { %v1930_v1 = vpack.c.bf16 %v1768_v14, %v1760_v31  ;;  %v1932_v57 = vpack.c.bf16 %v1770_v59, %v1762_v35  ;;  %v1252_v43 = vadd.f32 %v4543_v54, %v4542_v39  ;;  %v1509_v34 = vadd.f32 %v4544_v21, %v4542_v39 }
 0x1e6   : > { %v1759_v23 = vmax.f32 %v1264_v20, 0.0  ;;  %v1761_v4 = vmax.f32 %v1521_v12, 0.0  ;;  %v1744_v41 = vmax.f32 %v4545_v56, 0.0  ;;  %v1746_v62 = vmax.f32 %v4546_v51, 0.0 }
 0x1e7   : > { %2094 = vmatpush2.bf16.msra.mxu0 %v1945_v55  ;;  %2137 = vmatpush2.bf16.msra.mxu1 %v1947_v32  ;;  %v1751_v58 = vmax.f32 %v1258_v6, 0.0  ;;  %v1753_v10 = vmax.f32 %v1515_v60, 0.0  ;;  %v1743_v3 = vmax.f32 %v1252_v43, 0.0  ;;  %v1745_v47 = vmax.f32 %v1509_v34, 0.0  ;;  %v1975_v32 = vpop.permute.xlu1 %1974 }
 0x1e8   : > { %2095 = vmatprep.subr.bf16.mxu0 %v1938_v2  ;;  %2138 = vmatprep.subr.bf16.mxu1 %v1940_v18  ;;  %v1929_v5 = vpack.c.bf16 %v1767_v38, %v1759_v23  ;;  %v1931_v8 = vpack.c.bf16 %v1769_v25, %v1761_v4  ;;  %v1922_v24 = vpack.c.bf16 %v1752_v40, %v1744_v41 }
 0x1e9   : > { %v1924_v15 = vpack.c.bf16 %v1754_v33, %v1746_v62  ;;  %v1921_v30 = vpack.c.bf16 %v1751_v58, %v1743_v3  ;;  %v1923_v27 = vpack.c.bf16 %v1753_v10, %v1745_v47 }
 0x1eb   : > { %2096 = vmatpush2.bf16.msra.mxu0 %v1937_v16  ;;  %2139 = vmatpush2.bf16.msra.mxu1 %v1939_v50 }
 0x1ec   : > { %2097 = vmatprep.subr.bf16.mxu0 %v1930_v1  ;;  %2140 = vmatprep.subr.bf16.mxu1 %v1932_v57 }
 0x1ef   : > { %2098 = vmatpush2.bf16.msra.mxu0 %v1929_v5  ;;  %2141 = vmatpush2.bf16.msra.mxu1 %v1931_v8 }
 0x1f0   : > { %2099 = vmatprep.subr.bf16.mxu0 %v1922_v24  ;;  %2142 = vmatprep.subr.bf16.mxu1 %v1924_v15 }
 0x1f3   : > { %2100 = vmatpush2.bf16.msra.mxu0 %v1921_v30  ;;  %2143 = vmatpush2.bf16.msra.mxu1 %v1923_v27 }
 0x1f4   : > { %2101 = vmatprep.subr.bf16.mxu0 %v4547_v63  ;;  %2144 = vmatprep.subr.bf16.mxu1 %v4548_v22 }
 0x1f7   : > { %2102 = vmatpush2.bf16.msra.mxu0 %v4549_v0  ;;  %2145 = vmatpush2.bf16.msra.mxu1 %v4550_v44 }
 0x1f8   : > { %2103 = vmatprep.subr.bf16.mxu0 %v4551_v29  ;;  %2146 = vmatprep.subr.bf16.mxu1 %v4552_v61 }
 0x1fb   : > { %2104 = vmatpush2.bf16.msra.mxu0 %v4553_v13  ;;  %2147 = vmatpush2.bf16.msra.mxu1 %v4554_v46 }
 0x1fe   : > { %2106 = vmatmul.mubr.bf16.vlgmr.msra.gmra.mxu0 %v4555_v53  ;;  %2149 = vmatmul.mubr.bf16.vlgmr.msra.gmra.mxu1 %v4555_v53 }
 0x240   : > { %v2021_v48 = vpop.f32.mrf.mxu0 }
 0x241   : > { %v2064_v45 = vpop.f32.mrf.mxu1  ;;  %v2022_v26 = vadd.f32 %v2021_v48, %v1970_v42 }
 0x242   : > { %v2065_v52 = vadd.f32 %v2064_v45, %v1970_v42  ;;  %v2023_v28 = vpop.f32.mrf.mxu0 }
 0x243   : > { %v2066_v55 = vpop.f32.mrf.mxu1  ;;  %2159 = vst [vmem:[%s4188_s12] sm:$0xff] %v2022_v26  ;;  %v2024_v14 = vadd.f32 %v2023_v28, %v1970_v42 }
 0x244   : > { %2161 = vst [vmem:[%s4188_s12 + $0x10] sm:$0xff] %v2065_v52  ;;  %v2067_v59 = vadd.f32 %v2066_v55, %v1970_v42  ;;  %v2025_v2 = vpop.f32.mrf.mxu0 }
 0x245   : > { %v2068_v18 = vpop.f32.mrf.mxu1  ;;  %2160 = vst [vmem:[%s4188_s12 + $0x8] sm:$0xff] %v2024_v14  ;;  %v2026_v20 = vadd.f32 %v2025_v2, %v1975_v32 }
 0x246   : > { %2162 = vst [vmem:[%s4188_s12 + $0x18] sm:$0xff] %v2067_v59  ;;  %v2069_v12 = vadd.f32 %v2068_v18, %v1975_v32  ;;  %v2027_v7 = vpop.f32.mrf.mxu0 }
 0x247   : > { %v2070_v17 = vpop.f32.mrf.mxu1  ;;  %2167 = vst [vmem:[%s4188_s12 + $0x40] sm:$0xff] %v2026_v20  ;;  %v2028_v9 = vadd.f32 %v2027_v7, %v1975_v32 }
 0x248   : > { %2169 = vst [vmem:[%s4188_s12 + $0x50] sm:$0xff] %v2069_v12  ;;  %v2071_v6 = vadd.f32 %v2070_v17, %v1975_v32 }
 0x249   : > { %2168 = vst [vmem:[%s4188_s12 + $0x48] sm:$0xff] %v2028_v9 }
 0x24a   : > { %2170 = vst [vmem:[%s4188_s12 + $0x58] sm:$0xff] %v2071_v6  ;;  %v2197_v39 = vld [vmem:[%s4188_s12] sm:$0xff] (%p2538_p4) }
 0x24b   : > { %v2201_v43 = vld [vmem:[%s4188_s12 + $0x10] sm:$0xff] (%p2538_p4)  ;;  %2198 = vst [vmem:[%s2184_s15] sm:$0xff] (%p2538_p4), %v2197_v39 }
 0x24c   : > { %v2199_v54 = vld [vmem:[%s4188_s12 + $0x8] sm:$0xff] (%p2538_p4)  ;;  %2202 = vst [vmem:[%s2184_s15 + $0x10] sm:$0xff] (%p2538_p4), %v2201_v43 }
 0x24d   : > { %v2203_v21 = vld [vmem:[%s4188_s12 + $0x18] sm:$0xff] (%p2538_p4)  ;;  %2200 = vst [vmem:[%s2184_s15 + $0x8] sm:$0xff] (%p2538_p4), %v2199_v54 }
 0x24e   : > { %2204 = vst [vmem:[%s2184_s15 + $0x18] sm:$0xff] (%p2538_p4), %v2203_v21  ;;  %v2213_v41 = vld [vmem:[%s4188_s12 + $0x40] sm:$0xff] (%p2538_p4) }
 0x24f   : > { %2214 = vst [vmem:[%s2184_s15 + $0x80] sm:$0xff] (%p2538_p4), %v2213_v41  ;;  %v2217_v62 = vld [vmem:[%s4188_s12 + $0x50] sm:$0xff] (%p2538_p4) }
 0x250   : > { %v2215_v51 = vld [vmem:[%s4188_s12 + $0x48] sm:$0xff] (%p2538_p4)  ;;  %2218 = vst [vmem:[%s2184_s15 + $0x90] sm:$0xff] (%p2538_p4), %v2217_v62 }
 0x251   : > { %v2219_v58 = vld [vmem:[%s4188_s12 + $0x58] sm:$0xff] (%p2538_p4)  ;;  %2216 = vst [vmem:[%s2184_s15 + $0x88] sm:$0xff] (%p2538_p4), %v2215_v51 }
 0x252   : > { %2220 = vst [vmem:[%s2184_s15 + $0x98] sm:$0xff] (%p2538_p4), %v2219_v58 }
 0x2be   : > { %v2107_v11 = vpop.f32.mrf.mxu0  ;;  %v2150_v60 = vpop.f32.mrf.mxu1 }
 0x2bf   : > { %v2108_v19 = vadd.f32 %v2107_v11, %v1970_v42  ;;  %v2151_v31 = vadd.f32 %v2150_v60, %v1970_v42 }
 0x2c0   : > { %v2109_v49 = vpop.f32.mrf.mxu0  ;;  %v2152_v35 = vpop.f32.mrf.mxu1 }
 0x2c1   : > { %2163 = vst [vmem:[%s4188_s12 + $0x20] sm:$0xff] %v2108_v19  ;;  %2165 = vst [vmem:[%s4188_s12 + $0x30] sm:$0xff] %v2151_v31  ;;  %v2110_v38 = vadd.f32 %v2109_v49, %v1970_v42  ;;  %v2153_v25 = vadd.f32 %v2152_v35, %v1970_v42 }
 0x2c2   : > { %v2111_v16 = vpop.f32.mrf.mxu0  ;;  %v2154_v50 = vpop.f32.mrf.mxu1 }
 0x2c3   : > { %2164 = vst [vmem:[%s4188_s12 + $0x28] sm:$0xff] %v2110_v38  ;;  %2166 = vst [vmem:[%s4188_s12 + $0x38] sm:$0xff] %v2153_v25  ;;  %v2112_v36 = vadd.f32 %v2111_v16, %v1975_v32  ;;  %v2155_v40 = vadd.f32 %v2154_v50, %v1975_v32  ;;  %2181 = sbr.rel (!%p2538_p4) target bundleno = 720 (0x2d0), region = 44 }
 0x2c4   : > { %v2113_v37 = vpop.f32.mrf.mxu0  ;;  %v2156_v33 = vpop.f32.mrf.mxu1 }
 0x2c5   : > { %2171 = vst [vmem:[%s4188_s12 + $0x60] sm:$0xff] %v2112_v36  ;;  %2173 = vst [vmem:[%s4188_s12 + $0x70] sm:$0xff] %v2155_v40  ;;  %v2114_v1 = vadd.f32 %v2113_v37, %v1975_v32  ;;  %v2157_v57 = vadd.f32 %v2156_v33, %v1975_v32 }
 0x2c7   : > { %2172 = vst [vmem:[%s4188_s12 + $0x68] sm:$0xff] %v2114_v1  ;;  %2174 = vst [vmem:[%s4188_s12 + $0x78] sm:$0xff] %v2157_v57 }
 0x2c8   : > { %v2205_v34 = vld [vmem:[%s4188_s12 + $0x20] sm:$0xff]  ;;  %v2209_v4 = vld [vmem:[%s4188_s12 + $0x30] sm:$0xff] }
 0x2c9   : > { %2206 = vst [vmem:[%s2184_s15 + $0x20] sm:$0xff] %v2205_v34  ;;  %2210 = vst [vmem:[%s2184_s15 + $0x30] sm:$0xff] %v2209_v4 }
 0x2ca   : > { %v2207_v23 = vld [vmem:[%s4188_s12 + $0x28] sm:$0xff]  ;;  %v2211_v56 = vld [vmem:[%s4188_s12 + $0x38] sm:$0xff] }
 0x2cb   : > { %2208 = vst [vmem:[%s2184_s15 + $0x28] sm:$0xff] %v2207_v23  ;;  %2212 = vst [vmem:[%s2184_s15 + $0x38] sm:$0xff] %v2211_v56 }
 0x2cc   : > { %v2221_v10 = vld [vmem:[%s4188_s12 + $0x60] sm:$0xff]  ;;  %v2225_v8 = vld [vmem:[%s4188_s12 + $0x70] sm:$0xff] }
 0x2cd   : > { %2222 = vst [vmem:[%s2184_s15 + $0xa0] sm:$0xff] %v2221_v10  ;;  %2226 = vst [vmem:[%s2184_s15 + $0xb0] sm:$0xff] %v2225_v8 }
 0x2ce   : > { %v2223_v5 = vld [vmem:[%s4188_s12 + $0x68] sm:$0xff]  ;;  %v2227_v24 = vld [vmem:[%s4188_s12 + $0x78] sm:$0xff] }
 0x2cf   : > { %2224 = vst [vmem:[%s2184_s15 + $0xa8] sm:$0xff] %v2223_v5  ;;  %2228 = vst [vmem:[%s2184_s15 + $0xb8] sm:$0xff] %v2227_v24 }
 0x2d0 PF: > { %p12_p8 = scmp.ge.s32.totalorder %s2528_s22, 4   ;;  %s4556_s18 = smov %s2475_s19 }
 0x2d1   : > { %s4557_s19 = smov %s2536_s25  ;;  %s4558_s20 = smov %s2528_s22 }
 0x2d2   :  { %14 = sbr.rel (!%p12_p8) target bundleno = 2 (0x2), region = 93 }

</bundles_post_ra>
